<compile_context>
chip_gen: v5e
topology: v5e:2x2
jax: 0.10.0
libtpu: 0.0.40
codegen_flags: <defaults>
</compile_context>

<pallas_src>
import math
from functools import partial

import jax
import jax.numpy as jnp
from jax.experimental import pallas as pl
from jax.experimental.pallas import tpu as pltpu


# 48 MiB: above v5e's 16 MiB / v6e's 32 MiB scoped defaults, with headroom
# under v7x's 64 MiB physical VMEM per TensorCore.
_VMEM_LIMIT = 48 * 1024 * 1024


# ----------------------------------------------------------------------------
# helpers
# ----------------------------------------------------------------------------

def _round_up(x, m):
    return ((x + m - 1) // m) * m


def _pick_tile(dim, target, align):
    """Largest tile <= target that divides `dim` and is a multiple of `align`,
    falling back to the full dim (always a legal Mosaic block shape)."""
    if dim <= target:
        return dim
    t = (target // align) * align
    while t >= align:
        if dim % t == 0:
            return t
        t -= align
    return dim


def _compiler_params(semantics):
    return pltpu.CompilerParams(dimension_semantics=semantics,
                                vmem_limit_bytes=_VMEM_LIMIT)


# ----------------------------------------------------------------------------
# Pallas kernels
# ----------------------------------------------------------------------------

def _matmul_bias_kernel(x_ref, w_ref, b_ref, o_ref, acc_ref):
    @pl.when(pl.program_id(2) == 0)
    def _():
        acc_ref[...] = jnp.zeros_like(acc_ref)

    acc_ref[...] += jnp.dot(x_ref[...], w_ref[...],
                            preferred_element_type=jnp.float32)

    @pl.when(pl.program_id(2) == pl.num_programs(2) - 1)
    def _():
        o_ref[...] = (acc_ref[...]
                      + b_ref[...].astype(jnp.float32)).astype(o_ref.dtype)


def _matmul_bias_res_kernel(x_ref, w_ref, b_ref, res_ref, o_ref, acc_ref):
    @pl.when(pl.program_id(2) == 0)
    def _():
        acc_ref[...] = jnp.zeros_like(acc_ref)

    acc_ref[...] += jnp.dot(x_ref[...], w_ref[...],
                            preferred_element_type=jnp.float32)

    @pl.when(pl.program_id(2) == pl.num_programs(2) - 1)
    def _():
        out = (acc_ref[...] + b_ref[...].astype(jnp.float32)
               + res_ref[...].astype(jnp.float32))
        o_ref[...] = out.astype(o_ref.dtype)


def _ln_matmul_kernel(x_ref, g_ref, b_ref, w_ref, bias_ref, o_ref, xn_ref, *,
                      gelu):
    # LayerNorm (f32 statistics over the full K) computed ONCE per row block
    # (at j == 0) into a bf16 VMEM scratch and reused for every N/tn column
    # tile; inner grid steps are pure MXU work.
    @pl.when(pl.program_id(1) == 0)
    def _():
        x = x_ref[...].astype(jnp.float32)
        mu = jnp.mean(x, axis=-1, keepdims=True)
        var = jnp.mean(jnp.square(x - mu), axis=-1, keepdims=True)
        xn = (x - mu) * jax.lax.rsqrt(var + 1e-5)
        xn_ref[...] = (xn * g_ref[...] + b_ref[...]).astype(xn_ref.dtype)

    acc = jnp.dot(xn_ref[...], w_ref[...], preferred_element_type=jnp.float32)
    acc = acc + bias_ref[...].astype(jnp.float32)
    if gelu:
        acc = acc * jax.nn.sigmoid(1.702 * acc)        # CLIP QuickGELU
    o_ref[...] = acc.astype(o_ref.dtype)


def _add_pos_ln_kernel(x_ref, pos_ref, g_ref, b_ref, o_ref):
    # ln_pre fused with the positional-embedding add (one fewer full HBM
    # round trip of the residual stream).
    x = x_ref[0].astype(jnp.float32) + pos_ref[...].astype(jnp.float32)
    mu = jnp.mean(x, axis=-1, keepdims=True)
    var = jnp.mean(jnp.square(x - mu), axis=-1, keepdims=True)
    y = (x - mu) * jax.lax.rsqrt(var + 1e-5)
    o_ref[0] = (y * g_ref[...] + b_ref[...]).astype(o_ref.dtype)


def _attn_kernel(q_ref, kv_ref, o_ref, *, heads, dh, dmodel, scale,
                 s_real, s_pad):
    # q_ref : (1, tq, 3*dmodel)  query-row chunk of the QKV slab
    # kv_ref: (1, S,  3*dmodel)  full slab for keys/values
    # Heads are Ref-sliced so only one head's operands / (tq, S) scores are
    # live at a time, and each head writes its lane slice of o_ref directly
    # (no concatenate, no whole-slab materialization).
    for h in range(heads):
        lo = h * dh
        q = q_ref[0, :, lo:lo + dh]                                  # (tq, dh)
        k = kv_ref[0, :, dmodel + lo:dmodel + lo + dh]               # (S, dh)
        v = kv_ref[0, :, 2 * dmodel + lo:2 * dmodel + lo + dh]       # (S, dh)
        # fold softmax scale into q (tq*dh elementwise work, not tq*S)
        qs = (q.astype(jnp.float32) * scale).astype(jnp.bfloat16)
        # contract last dims directly (no k.T relayout), f32 accumulate
        s = jax.lax.dot_general(qs, k, (((1,), (1,)), ((), ())),
                                preferred_element_type=jnp.float32)  # (tq, S)
        if s_real < s_pad:                       # mask padded keys
            key_id = jax.lax.broadcasted_iota(jnp.int32, s.shape, 1)
            s = jnp.where(key_id < s_real, s, -jnp.inf)
        m = jnp.max(s, axis=-1, keepdims=True)
        p = jnp.exp(s - m)
        l = jnp.sum(p, axis=-1, keepdims=True)
        o = jnp.dot(p.astype(jnp.bfloat16), v,
                    preferred_element_type=jnp.float32)
        o = o * pl.reciprocal(l, approx=True)
        o_ref[0, :, lo:lo + dh] = o.astype(o_ref.dtype)


# ----------------------------------------------------------------------------
# Pallas wrappers
# ----------------------------------------------------------------------------

def pallas_matmul_bias(x, w, b, *, residual=None, tm=256, tn=512, tk=1024):
    M, K = x.shape
    Kw, N = w.shape
    assert K == Kw
    tm = _pick_tile(M, tm, 8)
    tn = _pick_tile(N, tn, 128)
    tk = _pick_tile(K, tk, 128)
    b2 = b.reshape(1, N)
    in_specs = [pl.BlockSpec((tm, tk), lambda i, j, k: (i, k)),
                pl.BlockSpec((tk, tn), lambda i, j, k: (k, j)),
                pl.BlockSpec((1, tn), lambda i, j, k: (0, j))]
    args = [x, w, b2]
    if residual is None:
        kernel = _matmul_bias_kernel
    else:
        kernel = _matmul_bias_res_kernel
        in_specs.append(pl.BlockSpec((tm, tn), lambda i, j, k: (i, j)))
        args.append(residual)
    return pl.pallas_call(
        kernel,
        out_shape=jax.ShapeDtypeStruct((M, N), x.dtype),
        grid=(M // tm, N // tn, K // tk),
        in_specs=in_specs,
        out_specs=pl.BlockSpec((tm, tn), lambda i, j, k: (i, j)),
        scratch_shapes=[pltpu.VMEM((tm, tn), jnp.float32)],
        compiler_params=_compiler_params(("parallel", "parallel", "arbitrary")),
    )(*args)


def pallas_ln_matmul(x, g, b, w, bias, *, gelu=False, tm=256, tn=512):
    M, K = x.shape
    Kw, N = w.shape
    assert K == Kw
    tm = _pick_tile(M, tm, 8)
    tn = _pick_tile(N, tn, 128)
    g2 = g.reshape(1, K).astype(jnp.float32)
    b2 = b.reshape(1, K).astype(jnp.float32)
    bias2 = bias.reshape(1, N)
    return pl.pallas_call(
        partial(_ln_matmul_kernel, gelu=gelu),
        out_shape=jax.ShapeDtypeStruct((M, N), x.dtype),
        grid=(M // tm, N // tn),
        in_specs=[pl.BlockSpec((tm, K), lambda i, j: (i, 0)),
                  pl.BlockSpec((1, K), lambda i, j: (0, 0)),
                  pl.BlockSpec((1, K), lambda i, j: (0, 0)),
                  pl.BlockSpec((K, tn), lambda i, j: (0, j)),
                  pl.BlockSpec((1, tn), lambda i, j: (0, j))],
        out_specs=pl.BlockSpec((tm, tn), lambda i, j: (i, j)),
        scratch_shapes=[pltpu.VMEM((tm, K), jnp.bfloat16)],
        compiler_params=_compiler_params(("parallel", "arbitrary")),
    )(x, g2, b2, w, bias2)


def pallas_add_pos_ln(x, pos, g, b):
    B, S, D = x.shape
    g2 = g.reshape(1, D).astype(jnp.float32)
    b2 = b.reshape(1, D).astype(jnp.float32)
    return pl.pallas_call(
        _add_pos_ln_kernel,
        out_shape=jax.ShapeDtypeStruct((B, S, D), x.dtype),
        grid=(B,),
        in_specs=[pl.BlockSpec((1, S, D), lambda i: (i, 0, 0)),
                  pl.BlockSpec((S, D), lambda i: (0, 0)),
                  pl.BlockSpec((1, D), lambda i: (0, 0)),
                  pl.BlockSpec((1, D), lambda i: (0, 0))],
        out_specs=pl.BlockSpec((1, S, D), lambda i: (i, 0, 0)),
        compiler_params=_compiler_params(("parallel",)),
    )(x, pos, g2, b2)


def pallas_attention(qkv, heads, s_real, *, tq=128):
    # qkv: (B, S_pad, 3*D), Q|K|V concatenated along features, heads contiguous.
    B, S, threeD = qkv.shape
    D = threeD // 3
    dh = D // heads
    assert heads * dh == D
    scale = 1.0 / math.sqrt(dh)
    tq = _pick_tile(S, tq, 8)
    kernel = partial(_attn_kernel, heads=heads, dh=dh, dmodel=D, scale=scale,
                     s_real=s_real, s_pad=S)
    return pl.pallas_call(
        kernel,
        out_shape=jax.ShapeDtypeStruct((B, S, D), qkv.dtype),
        grid=(B, S // tq),
        # The same QKV slab is passed twice: once chunked over query rows,
        # once full for keys/values (full block is reused across qi).
        in_specs=[pl.BlockSpec((1, tq, threeD), lambda b, qi: (b, qi, 0)),
                  pl.BlockSpec((1, S, threeD), lambda b, qi: (b, 0, 0))],
        out_specs=pl.BlockSpec((1, tq, D), lambda b, qi: (b, qi, 0)),
        compiler_params=_compiler_params(("parallel", "parallel")),
    )(qkv, qkv)


# ----------------------------------------------------------------------------
# Synthetic CLIP ViT parameters (deterministic init, shapes follow CLIP ViT)
# ----------------------------------------------------------------------------

def init_params(key, *, in_ch, image_size, patch, width, layers, heads, out_dim):
    grid = image_size // patch
    seq = 1 + grid * grid
    keys = jax.random.split(key, 4 + 8 * layers)
    ki = iter(keys)

    def nrm(shape, scale):
        return (scale * jax.random.normal(next(ki), shape, jnp.float32)
                ).astype(jnp.bfloat16)

    k_in = in_ch * patch * patch
    k_pad = _round_up(k_in, 128)                       # lane/MXU-aligned K
    conv = nrm((width, in_ch, patch, patch), 0.02)     # PyTorch conv1 layout
    conv_wT = conv.reshape(width, -1).T                # (k_in, width)
    conv_wT = jnp.pad(conv_wT, ((0, k_pad - k_in), (0, 0)))

    params = {
        "width": width, "heads": heads, "patch": patch, "out_dim": out_dim,
        "conv1_wT": conv_wT,                           # (k_pad, width) bf16
        "class_embedding": nrm((width,), width ** -0.5),
        "positional_embedding": nrm((seq, width), 0.01),
        "ln_pre_g": jnp.ones((width,), jnp.float32),
        "ln_pre_b": jnp.zeros((width,), jnp.float32),
        "ln_post_g": jnp.ones((width,), jnp.float32),
        "ln_post_b": jnp.zeros((width,), jnp.float32),
        "proj": nrm((width, out_dim), width ** -0.5),
        "blocks": [],
    }
    for _ in range(layers):
        params["blocks"].append({
            "ln1_g": jnp.ones((width,), jnp.float32),
            "ln1_b": jnp.zeros((width,), jnp.float32),
            "in_proj_w": nrm((width, 3 * width), width ** -0.5),
            "in_proj_b": nrm((3 * width,), 0.01),
            "out_proj_w": nrm((width, width), width ** -0.5),
            "out_proj_b": nrm((width,), 0.01),
            "ln2_g": jnp.ones((width,), jnp.float32),
            "ln2_b": jnp.zeros((width,), jnp.float32),
            "fc_w": nrm((width, 4 * width), width ** -0.5),
            "fc_b": nrm((4 * width,), 0.01),
            "cproj_w": nrm((4 * width, width), (4 * width) ** -0.5),
            "cproj_b": nrm((width,), 0.01),
        })
    return params


# ----------------------------------------------------------------------------
# Forward pass  ==  ImageEncoder.forward(images) == CLIP model.encode_image
# ----------------------------------------------------------------------------

def residual_attention_block(x2, p, B, S_pad, S_real, D, heads):
    # x2: (B*S_pad, D) bf16 residual stream.
    # x = x + attn(ln_1(x)) — LN fused into QKV projection, residual + bias
    # fused into the output projection.
    qkv = pallas_ln_matmul(x2, p["ln1_g"], p["ln1_b"],
                           p["in_proj_w"], p["in_proj_b"])       # (B*S, 3D)
    a = pallas_attention(qkv.reshape(B, S_pad, 3 * D), heads, S_real)
    x2 = pallas_matmul_bias(a.reshape(B * S_pad, D),
                            p["out_proj_w"], p["out_proj_b"],
                            residual=x2)                         # (B*S, D)
    # x = x + mlp(ln_2(x)) — LN + QuickGELU fused into fc, residual into cproj.
    h = pallas_ln_matmul(x2, p["ln2_g"], p["ln2_b"],
                         p["fc_w"], p["fc_b"], gelu=True)        # (B*S, 4D)
    x2 = pallas_matmul_bias(h, p["cproj_w"], p["cproj_b"], residual=x2)
    return x2


def encode_image(params, images):
    # images: (B, C, H, W) float32, NCHW as in PyTorch.
    B, C, H, W = images.shape
    P = params["patch"]
    D = params["width"]
    heads = params["heads"]
    gh, gw = H // P, W // P
    k_in = C * P * P
    k_pad = params["conv1_wT"].shape[0]

    # Patch-embed conv (kernel==stride, bias-free) as a tiled bf16 matmul.
    # Cast to bf16 before the transpose (halves its HBM traffic) and zero-pad
    # the contraction dim to a multiple of 128 (lane-dense MXU operands).
    patches = images.astype(jnp.bfloat16).reshape(B, C, gh, P, gw, P)
    patches = patches.transpose(0, 2, 4, 1, 3, 5).reshape(B * gh * gw, k_in)
    if k_pad > k_in:
        patches = jnp.pad(patches, ((0, 0), (0, k_pad - k_in)))
    x = pallas_matmul_bias(patches, params["conv1_wT"],
                           jnp.zeros((D,), jnp.bfloat16))        # (B*gh*gw, D)
    x = x.reshape(B, gh * gw, D)

    # Prepend class token, then pad the token axis so every downstream matmul
    # keeps large (non-collapsed) M tiles (e.g. CLIP's S=257 -> 384). Padded
    # rows are zeros and padded keys are masked inside attention, so real
    # tokens (incl. CLS) are unaffected.
    S_real = 1 + gh * gw
    align = 128 if S_real > 64 else 8
    S_pad = _round_up(S_real, align)
    cls = jnp.broadcast_to(params["class_embedding"][None, None, :],
                           (B, 1, D)).astype(jnp.bfloat16)
    x = jnp.concatenate([cls, x], axis=1)                        # (B, S_real, D)
    if S_pad > S_real:
        x = jnp.pad(x, ((0, 0), (0, S_pad - S_real), (0, 0)))
    pos = params["positional_embedding"]
    if S_pad > S_real:
        pos = jnp.pad(pos, ((0, S_pad - S_real), (0, 0)))

    # ln_pre fused with the positional-embedding add.
    x = pallas_add_pos_ln(x, pos, params["ln_pre_g"], params["ln_pre_b"])
    x2 = x.reshape(B * S_pad, D)
    # TODO(synk): residual stream is carried in bf16; switch the residual-
    # producing matmul outputs to f32 for strict parity with an fp32 reference.

    for blk in params["blocks"]:
        x2 = residual_attention_block(x2, blk, B, S_pad, S_real, D, heads)

    # ln_post on the [CLS] token fused with the final projection.
    cls_tok = x2.reshape(B, S_pad, D)[:, 0, :]                   # (B, D)
    out = pallas_ln_matmul(cls_tok, params["ln_post_g"], params["ln_post_b"],
                           params["proj"],
                           jnp.zeros((params["out_dim"],), jnp.bfloat16))
    return out.astype(jnp.float32)                               # (B, out_dim)


# ----------------------------------------------------------------------------
# Driver
# ----------------------------------------------------------------------------

if __name__ == "__main__":
    key = jax.random.PRNGKey(0)
    k_param, k_img = jax.random.split(key)

    B, C, IMG, PATCH = 2, 3, 16, 8
    WIDTH, LAYERS, HEADS, OUT_DIM = 32, 2, 4, 16

    params = init_params(k_param, in_ch=C, image_size=IMG, patch=PATCH,
                         width=WIDTH, layers=LAYERS, heads=HEADS,
                         out_dim=OUT_DIM)
    images = jax.random.normal(k_img, (B, C, IMG, IMG), jnp.float32)

    encode = jax.jit(lambda imgs: encode_image(params, imgs))
    out = jax.block_until_ready(encode(images))

    assert out.shape == (B, OUT_DIM), out.shape
    assert bool(jnp.all(jnp.isfinite(out)))
    print("KERNEL_OK")
</pallas_src>

<mosaic_0001>
module attributes {stable_mosaic.version = 11 : i64} {
  func.func @_matmul_bias_kernel(%arg0: i32, %arg1: i32, %arg2: i32, %arg3: memref<8x256xbf16, #tpu.memory_space<vmem>>, %arg4: memref<256x32xbf16, #tpu.memory_space<vmem>>, %arg5: memref<1x32xbf16, #tpu.memory_space<vmem>>, %arg6: memref<8x32xbf16, #tpu.memory_space<vmem>>, %arg7: memref<8x32xf32, #tpu.memory_space<vmem>>) attributes {dimension_semantics = [#tpu.dimension_semantics<parallel>, #tpu.dimension_semantics<parallel>, #tpu.dimension_semantics<arbitrary>], iteration_bounds = array<i64: 1, 1, 1>, scalar_prefetch = 0 : i64, scratch_operands = 1 : i64, tpu.core_type = #tpu.core_type<tc>, window_params = [{transform_indices = @transform_0, window_bounds = array<i64: 8, 256>}, {transform_indices = @transform_1, window_bounds = array<i64: 256, 32>}, {transform_indices = @transform_2, window_bounds = array<i64: 1, 32>}, {transform_indices = @transform_3, window_bounds = array<i64: 8, 32>}]} {
    %c0_i32 = arith.constant 0 : i32
    %0 = arith.cmpi eq, %arg2, %c0_i32 : i32
    %1 = arith.extui %0 : i1 to i32
    %c0_i32_0 = arith.constant 0 : i32
    %2 = arith.cmpi ne, %1, %c0_i32_0 : i32
    scf.if %2 {
      %cst_10 = arith.constant 0.000000e+00 : f32
      %12 = vector.broadcast %cst_10 : f32 to vector<8x32xf32>
      %c0_11 = arith.constant 0 : index
      %c0_12 = arith.constant 0 : index
      %13 = vector.load %arg7[%c0_11, %c0_12] : memref<8x32xf32, #tpu.memory_space<vmem>>, vector<8x32xf32>
      tpu.vector_store %arg7[%c0_11, %c0_12], %12 {strides = array<i32>} : memref<8x32xf32, #tpu.memory_space<vmem>>, vector<8x32xf32>,
    } else {
    }
    %c0 = arith.constant 0 : index
    %c0_1 = arith.constant 0 : index
    %3 = vector.load %arg7[%c0, %c0_1] : memref<8x32xf32, #tpu.memory_space<vmem>>, vector<8x32xf32>
    %c0_2 = arith.constant 0 : index
    %c0_3 = arith.constant 0 : index
    %4 = vector.load %arg3[%c0_2, %c0_3] : memref<8x256xbf16, #tpu.memory_space<vmem>>, vector<8x256xbf16>
    %c0_4 = arith.constant 0 : index
    %c0_5 = arith.constant 0 : index
    %5 = vector.load %arg4[%c0_4, %c0_5] : memref<256x32xbf16, #tpu.memory_space<vmem>>, vector<256x32xbf16>
    %cst = arith.constant dense<0.000000e+00> : vector<8x32xf32>
    %6 = tpu.matmul %4, %5, %cst {dimension_numbers = #tpu.dot_dimension_numbers<[1], [0], [0], [1], [0, 0, 1, 1], [], []>} : vector<8x256xbf16>, vector<256x32xbf16>, vector<8x32xf32> -> vector<8x32xf32>
    %7 = arith.addf %3, %6 : vector<8x32xf32>
    %c0_6 = arith.constant 0 : index
    %c0_7 = arith.constant 0 : index
    %8 = vector.load %arg7[%c0_6, %c0_7] : memref<8x32xf32, #tpu.memory_space<vmem>>, vector<8x32xf32>
    tpu.vector_store %arg7[%c0_6, %c0_7], %7 {strides = array<i32>} : memref<8x32xf32, #tpu.memory_space<vmem>>, vector<8x32xf32>,
    %c0_i32_8 = arith.constant 0 : i32
    %9 = arith.cmpi eq, %arg2, %c0_i32_8 : i32
    %10 = arith.extui %9 : i1 to i32
    %c0_i32_9 = arith.constant 0 : i32
    %11 = arith.cmpi ne, %10, %c0_i32_9 : i32
    scf.if %11 {
      %c0_10 = arith.constant 0 : index
      %c0_11 = arith.constant 0 : index
      %12 = vector.load %arg7[%c0_10, %c0_11] : memref<8x32xf32, #tpu.memory_space<vmem>>, vector<8x32xf32>
      %c0_12 = arith.constant 0 : index
      %c0_13 = arith.constant 0 : index
      %13 = vector.load %arg5[%c0_12, %c0_13] : memref<1x32xbf16, #tpu.memory_space<vmem>>, vector<1x32xbf16>
      %14 = arith.extf %13 : vector<1x32xbf16> to vector<1x32xf32>
      %15 = vector.broadcast %14 : vector<1x32xf32> to vector<8x32xf32>
      %16 = arith.addf %12, %15 : vector<8x32xf32>
      %17 = arith.truncf %16 : vector<8x32xf32> to vector<8x32xbf16>
      %c0_14 = arith.constant 0 : index
      %c0_15 = arith.constant 0 : index
      %18 = vector.load %arg6[%c0_14, %c0_15] : memref<8x32xbf16, #tpu.memory_space<vmem>>, vector<8x32xbf16>
      tpu.vector_store %arg6[%c0_14, %c0_15], %17 {strides = array<i32>} : memref<8x32xbf16, #tpu.memory_space<vmem>>, vector<8x32xbf16>,
    } else {
    }
    return
  }
  func.func @transform_0(%arg0: i32, %arg1: i32, %arg2: i32) -> (i32, i32) {
    %c0_i32 = arith.constant 0 : i32
    return %arg0, %arg2 : i32, i32
  }
  func.func @transform_1(%arg0: i32, %arg1: i32, %arg2: i32) -> (i32, i32) {
    %c0_i32 = arith.constant 0 : i32
    return %arg2, %arg1 : i32, i32
  }
  func.func @transform_2(%arg0: i32, %arg1: i32, %arg2: i32) -> (i32, i32) {
    %c0_i32 = arith.constant 0 : i32
    %c0_i32_0 = arith.constant 0 : i32
    return %c0_i32, %arg1 : i32, i32
  }
  func.func @transform_3(%arg0: i32, %arg1: i32, %arg2: i32) -> (i32, i32) {
    %c0_i32 = arith.constant 0 : i32
    return %arg0, %arg1 : i32, i32
  }
}

module attributes {stable_mosaic.version = 11 : i64} {
  func.func @_add_pos_ln_kernel(%arg0: i32, %arg1: memref<1x8x32xbf16, #tpu.memory_space<vmem>>, %arg2: memref<8x32xbf16, #tpu.memory_space<vmem>>, %arg3: memref<1x32xf32, #tpu.memory_space<vmem>>, %arg4: memref<1x32xf32, #tpu.memory_space<vmem>>, %arg5: memref<1x8x32xbf16, #tpu.memory_space<vmem>>) attributes {dimension_semantics = [#tpu.dimension_semantics<parallel>], iteration_bounds = array<i64: 2>, scalar_prefetch = 0 : i64, scratch_operands = 0 : i64, tpu.core_type = #tpu.core_type<tc>, window_params = [{transform_indices = @transform_0, window_bounds = array<i64: 1, 8, 32>}, {pipeline_mode = #tpu.pipeline_mode<synchronous>, transform_indices = @transform_1, window_bounds = array<i64: 8, 32>}, {pipeline_mode = #tpu.pipeline_mode<synchronous>, transform_indices = @transform_2, window_bounds = array<i64: 1, 32>}, {pipeline_mode = #tpu.pipeline_mode<synchronous>, transform_indices = @transform_3, window_bounds = array<i64: 1, 32>}, {transform_indices = @transform_4, window_bounds = array<i64: 1, 8, 32>}]} {
    %c0 = arith.constant 0 : index
    %c0_0 = arith.constant 0 : index
    %c0_1 = arith.constant 0 : index
    %0 = vector.load %arg1[%c0, %c0_0, %c0_1] : memref<1x8x32xbf16, #tpu.memory_space<vmem>>, vector<1x8x32xbf16>
    %1 = vector.shape_cast %0 : vector<1x8x32xbf16> to vector<8x32xbf16>
    %2 = arith.extf %1 : vector<8x32xbf16> to vector<8x32xf32>
    %c0_2 = arith.constant 0 : index
    %c0_3 = arith.constant 0 : index
    %3 = vector.load %arg2[%c0_2, %c0_3] : memref<8x32xbf16, #tpu.memory_space<vmem>>, vector<8x32xbf16>
    %4 = arith.extf %3 : vector<8x32xbf16> to vector<8x32xf32>
    %5 = arith.addf %2, %4 : vector<8x32xf32>
    %cst = arith.constant dense<0.000000e+00> : vector<8xf32>
    %6 = vector.multi_reduction <add>, %5, %cst [1] : vector<8x32xf32> to vector<8xf32>
    %7 = vector.shape_cast %6 : vector<8xf32> to vector<8x1xf32>
    %cst_4 = arith.constant 3.200000e+01 : f32
    %8 = vector.broadcast %cst_4 : f32 to vector<8x1xf32>
    %9 = arith.divf %7, %8 : vector<8x1xf32>
    %10 = vector.broadcast %9 : vector<8x1xf32> to vector<8x32xf32>
    %11 = arith.subf %5, %10 : vector<8x32xf32>
    %12 = arith.mulf %11, %11 : vector<8x32xf32>
    %cst_5 = arith.constant dense<0.000000e+00> : vector<8xf32>
    %13 = vector.multi_reduction <add>, %12, %cst_5 [1] : vector<8x32xf32> to vector<8xf32>
    %14 = vector.shape_cast %13 : vector<8xf32> to vector<8x1xf32>
    %cst_6 = arith.constant 3.200000e+01 : f32
    %15 = vector.broadcast %cst_6 : f32 to vector<8x1xf32>
    %16 = arith.divf %14, %15 : vector<8x1xf32>
    %17 = vector.broadcast %9 : vector<8x1xf32> to vector<8x32xf32>
    %18 = arith.subf %5, %17 : vector<8x32xf32>
    %cst_7 = arith.constant 9.99999974E-6 : f32
    %19 = vector.broadcast %cst_7 : f32 to vector<8x1xf32>
    %20 = arith.addf %16, %19 : vector<8x1xf32>
    %21 = math.rsqrt %20 : vector<8x1xf32>
    %22 = vector.broadcast %21 : vector<8x1xf32> to vector<8x32xf32>
    %23 = arith.mulf %18, %22 : vector<8x32xf32>
    %c0_8 = arith.constant 0 : index
    %c0_9 = arith.constant 0 : index
    %24 = vector.load %arg3[%c0_8, %c0_9] : memref<1x32xf32, #tpu.memory_space<vmem>>, vector<1x32xf32>
    %25 = vector.broadcast %24 : vector<1x32xf32> to vector<8x32xf32>
    %26 = arith.mulf %23, %25 : vector<8x32xf32>
    %c0_10 = arith.constant 0 : index
    %c0_11 = arith.constant 0 : index
    %27 = vector.load %arg4[%c0_10, %c0_11] : memref<1x32xf32, #tpu.memory_space<vmem>>, vector<1x32xf32>
    %28 = vector.broadcast %27 : vector<1x32xf32> to vector<8x32xf32>
    %29 = arith.addf %26, %28 : vector<8x32xf32>
    %30 = arith.truncf %29 : vector<8x32xf32> to vector<8x32xbf16>
    %c0_12 = arith.constant 0 : index
    %c0_13 = arith.constant 0 : index
    %c0_14 = arith.constant 0 : index
    %31 = vector.load %arg5[%c0_12, %c0_13, %c0_14] : memref<1x8x32xbf16, #tpu.memory_space<vmem>>, vector<1x8x32xbf16>
    %32 = vector.shape_cast %31 : vector<1x8x32xbf16> to vector<8x32xbf16>
    %33 = vector.shape_cast %30 : vector<8x32xbf16> to vector<1x8x32xbf16>
    tpu.vector_store %arg5[%c0_12, %c0_13, %c0_14], %33 {strides = array<i32>} : memref<1x8x32xbf16, #tpu.memory_space<vmem>>, vector<1x8x32xbf16>,
    return
  }
  func.func @transform_0(%arg0: i32) -> (i32, i32, i32) {
    %c0_i32 = arith.constant 0 : i32
    %c0_i32_0 = arith.constant 0 : i32
    %c0_i32_1 = arith.constant 0 : i32
    return %arg0, %c0_i32, %c0_i32_0 : i32, i32, i32
  }
  func.func @transform_1(%arg0: i32) -> (i32, i32) {
    %c0_i32 = arith.constant 0 : i32
    %c0_i32_0 = arith.constant 0 : i32
    %c0_i32_1 = arith.constant 0 : i32
    return %c0_i32, %c0_i32_0 : i32, i32
  }
  func.func @transform_2(%arg0: i32) -> (i32, i32) {
    %c0_i32 = arith.constant 0 : i32
    %c0_i32_0 = arith.constant 0 : i32
    %c0_i32_1 = arith.constant 0 : i32
    return %c0_i32, %c0_i32_0 : i32, i32
  }
  func.func @transform_3(%arg0: i32) -> (i32, i32) {
    %c0_i32 = arith.constant 0 : i32
    %c0_i32_0 = arith.constant 0 : i32
    %c0_i32_1 = arith.constant 0 : i32
    return %c0_i32, %c0_i32_0 : i32, i32
  }
  func.func @transform_4(%arg0: i32) -> (i32, i32, i32) {
    %c0_i32 = arith.constant 0 : i32
    %c0_i32_0 = arith.constant 0 : i32
    %c0_i32_1 = arith.constant 0 : i32
    return %arg0, %c0_i32, %c0_i32_0 : i32, i32, i32
  }
}

module attributes {stable_mosaic.version = 11 : i64} {
  func.func @_attn_kernel(%arg0: i32, %arg1: i32, %arg2: memref<1x8x96xbf16, #tpu.memory_space<vmem>>, %arg3: memref<1x8x96xbf16, #tpu.memory_space<vmem>>, %arg4: memref<1x8x32xbf16, #tpu.memory_space<vmem>>) attributes {dimension_semantics = [#tpu.dimension_semantics<parallel>, #tpu.dimension_semantics<parallel>], iteration_bounds = array<i64: 2, 1>, scalar_prefetch = 0 : i64, scratch_operands = 0 : i64, tpu.core_type = #tpu.core_type<tc>, window_params = [{transform_indices = @transform_0, window_bounds = array<i64: 1, 8, 96>}, {transform_indices = @transform_1, window_bounds = array<i64: 1, 8, 96>}, {transform_indices = @transform_2, window_bounds = array<i64: 1, 8, 32>}]} {
    %c0 = arith.constant 0 : index
    %c0_0 = arith.constant 0 : index
    %c0_1 = arith.constant 0 : index
    %0 = vector.load %arg2[%c0, %c0_0, %c0_1] : memref<1x8x96xbf16, #tpu.memory_space<vmem>>, vector<1x8x8xbf16>
    %1 = vector.shape_cast %0 : vector<1x8x8xbf16> to vector<8x8xbf16>
    %c0_2 = arith.constant 0 : index
    %c0_3 = arith.constant 0 : index
    %c32 = arith.constant 32 : index
    %2 = vector.load %arg3[%c0_2, %c0_3, %c32] : memref<1x8x96xbf16, #tpu.memory_space<vmem>>, vector<1x8x8xbf16>
    %3 = vector.shape_cast %2 : vector<1x8x8xbf16> to vector<8x8xbf16>
    %c0_4 = arith.constant 0 : index
    %c0_5 = arith.constant 0 : index
    %c64 = arith.constant 64 : index
    %4 = vector.load %arg3[%c0_4, %c0_5, %c64] : memref<1x8x96xbf16, #tpu.memory_space<vmem>>, vector<1x8x8xbf16>
    %5 = vector.shape_cast %4 : vector<1x8x8xbf16> to vector<8x8xbf16>
    %6 = arith.extf %1 : vector<8x8xbf16> to vector<8x8xf32>
    %cst = arith.constant 0.353553385 : f32
    %7 = vector.broadcast %cst : f32 to vector<8x8xf32>
    %8 = arith.mulf %6, %7 : vector<8x8xf32>
    %9 = arith.truncf %8 : vector<8x8xf32> to vector<8x8xbf16>
    %cst_6 = arith.constant dense<0.000000e+00> : vector<8x8xf32>
    %10 = tpu.matmul %9, %3, %cst_6 {dimension_numbers = #tpu.dot_dimension_numbers<[1], [1], [0], [0], [0, 0, 1, 0], [], []>} : vector<8x8xbf16>, vector<8x8xbf16>, vector<8x8xf32> -> vector<8x8xf32>
    %11 = tpu.iota {dimensions = array<i32: 1>} : vector<8x8xi32>
    %c5_i32 = arith.constant 5 : i32
    %12 = vector.broadcast %c5_i32 : i32 to vector<8x8xi32>
    %13 = arith.cmpi slt, %11, %12 : vector<8x8xi32>
    %cst_7 = arith.constant 0xFF800000 : f32
    %14 = vector.broadcast %cst_7 : f32 to vector<8x8xf32>
    %15 = arith.select %13, %10, %14 : vector<8x8xi1>, vector<8x8xf32>
    %cst_8 = arith.constant dense<0xFF800000> : vector<8xf32>
    %16 = vector.multi_reduction <maximumf>, %15, %cst_8 [1] : vector<8x8xf32> to vector<8xf32>
    %17 = vector.shape_cast %16 : vector<8xf32> to vector<8x1xf32>
    %18 = vector.broadcast %17 : vector<8x1xf32> to vector<8x8xf32>
    %19 = arith.subf %15, %18 : vector<8x8xf32>
    %20 = math.exp %19 : vector<8x8xf32>
    %cst_9 = arith.constant dense<0.000000e+00> : vector<8xf32>
    %21 = vector.multi_reduction <add>, %20, %cst_9 [1] : vector<8x8xf32> to vector<8xf32>
    %22 = vector.shape_cast %21 : vector<8xf32> to vector<8x1xf32>
    %23 = arith.truncf %20 : vector<8x8xf32> to vector<8x8xbf16>
    %cst_10 = arith.constant dense<0.000000e+00> : vector<8x8xf32>
    %24 = tpu.matmul %23, %5, %cst_10 {dimension_numbers = #tpu.dot_dimension_numbers<[1], [0], [0], [1], [0, 0, 1, 1], [], []>} : vector<8x8xbf16>, vector<8x8xbf16>, vector<8x8xf32> -> vector<8x8xf32>
    %25 = tpu.reciprocal %22 {approx = true} : vector<8x1xf32> -> vector<8x1xf32>
    %26 = vector.broadcast %25 : vector<8x1xf32> to vector<8x8xf32>
    %27 = arith.mulf %24, %26 : vector<8x8xf32>
    %28 = arith.truncf %27 : vector<8x8xf32> to vector<8x8xbf16>
    %c0_11 = arith.constant 0 : index
    %c0_12 = arith.constant 0 : index
    %c0_13 = arith.constant 0 : index
    %29 = vector.load %arg4[%c0_11, %c0_12, %c0_13] : memref<1x8x32xbf16, #tpu.memory_space<vmem>>, vector<1x8x8xbf16>
    %30 = vector.shape_cast %29 : vector<1x8x8xbf16> to vector<8x8xbf16>
    %31 = vector.shape_cast %28 : vector<8x8xbf16> to vector<1x8x8xbf16>
    tpu.vector_store %arg4[%c0_11, %c0_12, %c0_13], %31 {strides = array<i32>} : memref<1x8x32xbf16, #tpu.memory_space<vmem>>, vector<1x8x8xbf16>,
    %c0_14 = arith.constant 0 : index
    %c0_15 = arith.constant 0 : index
    %c8 = arith.constant 8 : index
    %32 = vector.load %arg2[%c0_14, %c0_15, %c8] : memref<1x8x96xbf16, #tpu.memory_space<vmem>>, vector<1x8x8xbf16>
    %33 = vector.shape_cast %32 : vector<1x8x8xbf16> to vector<8x8xbf16>
    %c0_16 = arith.constant 0 : index
    %c0_17 = arith.constant 0 : index
    %c40 = arith.constant 40 : index
    %34 = vector.load %arg3[%c0_16, %c0_17, %c40] : memref<1x8x96xbf16, #tpu.memory_space<vmem>>, vector<1x8x8xbf16>
    %35 = vector.shape_cast %34 : vector<1x8x8xbf16> to vector<8x8xbf16>
    %c0_18 = arith.constant 0 : index
    %c0_19 = arith.constant 0 : index
    %c72 = arith.constant 72 : index
    %36 = vector.load %arg3[%c0_18, %c0_19, %c72] : memref<1x8x96xbf16, #tpu.memory_space<vmem>>, vector<1x8x8xbf16>
    %37 = vector.shape_cast %36 : vector<1x8x8xbf16> to vector<8x8xbf16>
    %38 = arith.extf %33 : vector<8x8xbf16> to vector<8x8xf32>
    %cst_20 = arith.constant 0.353553385 : f32
    %39 = vector.broadcast %cst_20 : f32 to vector<8x8xf32>
    %40 = arith.mulf %38, %39 : vector<8x8xf32>
    %41 = arith.truncf %40 : vector<8x8xf32> to vector<8x8xbf16>
    %cst_21 = arith.constant dense<0.000000e+00> : vector<8x8xf32>
    %42 = tpu.matmul %41, %35, %cst_21 {dimension_numbers = #tpu.dot_dimension_numbers<[1], [1], [0], [0], [0, 0, 1, 0], [], []>} : vector<8x8xbf16>, vector<8x8xbf16>, vector<8x8xf32> -> vector<8x8xf32>
    %43 = tpu.iota {dimensions = array<i32: 1>} : vector<8x8xi32>
    %c5_i32_22 = arith.constant 5 : i32
    %44 = vector.broadcast %c5_i32_22 : i32 to vector<8x8xi32>
    %45 = arith.cmpi slt, %43, %44 : vector<8x8xi32>
    %cst_23 = arith.constant 0xFF800000 : f32
    %46 = vector.broadcast %cst_23 : f32 to vector<8x8xf32>
    %47 = arith.select %45, %42, %46 : vector<8x8xi1>, vector<8x8xf32>
    %cst_24 = arith.constant dense<0xFF800000> : vector<8xf32>
    %48 = vector.multi_reduction <maximumf>, %47, %cst_24 [1] : vector<8x8xf32> to vector<8xf32>
    %49 = vector.shape_cast %48 : vector<8xf32> to vector<8x1xf32>
    %50 = vector.broadcast %49 : vector<8x1xf32> to vector<8x8xf32>
    %51 = arith.subf %47, %50 : vector<8x8xf32>
    %52 = math.exp %51 : vector<8x8xf32>
    %cst_25 = arith.constant dense<0.000000e+00> : vector<8xf32>
    %53 = vector.multi_reduction <add>, %52, %cst_25 [1] : vector<8x8xf32> to vector<8xf32>
    %54 = vector.shape_cast %53 : vector<8xf32> to vector<8x1xf32>
    %55 = arith.truncf %52 : vector<8x8xf32> to vector<8x8xbf16>
    %cst_26 = arith.constant dense<0.000000e+00> : vector<8x8xf32>
    %56 = tpu.matmul %55, %37, %cst_26 {dimension_numbers = #tpu.dot_dimension_numbers<[1], [0], [0], [1], [0, 0, 1, 1], [], []>} : vector<8x8xbf16>, vector<8x8xbf16>, vector<8x8xf32> -> vector<8x8xf32>
    %57 = tpu.reciprocal %54 {approx = true} : vector<8x1xf32> -> vector<8x1xf32>
    %58 = vector.broadcast %57 : vector<8x1xf32> to vector<8x8xf32>
    %59 = arith.mulf %56, %58 : vector<8x8xf32>
    %60 = arith.truncf %59 : vector<8x8xf32> to vector<8x8xbf16>
    %c0_27 = arith.constant 0 : index
    %c0_28 = arith.constant 0 : index
    %c8_29 = arith.constant 8 : index
    %61 = vector.load %arg4[%c0_27, %c0_28, %c8_29] : memref<1x8x32xbf16, #tpu.memory_space<vmem>>, vector<1x8x8xbf16>
    %62 = vector.shape_cast %61 : vector<1x8x8xbf16> to vector<8x8xbf16>
    %63 = vector.shape_cast %60 : vector<8x8xbf16> to vector<1x8x8xbf16>
    tpu.vector_store %arg4[%c0_27, %c0_28, %c8_29], %63 {strides = array<i32>} : memref<1x8x32xbf16, #tpu.memory_space<vmem>>, vector<1x8x8xbf16>,
    %c0_30 = arith.constant 0 : index
    %c0_31 = arith.constant 0 : index
    %c16 = arith.constant 16 : index
    %64 = vector.load %arg2[%c0_30, %c0_31, %c16] : memref<1x8x96xbf16, #tpu.memory_space<vmem>>, vector<1x8x8xbf16>
    %65 = vector.shape_cast %64 : vector<1x8x8xbf16> to vector<8x8xbf16>
    %c0_32 = arith.constant 0 : index
    %c0_33 = arith.constant 0 : index
    %c48 = arith.constant 48 : index
    %66 = vector.load %arg3[%c0_32, %c0_33, %c48] : memref<1x8x96xbf16, #tpu.memory_space<vmem>>, vector<1x8x8xbf16>
    %67 = vector.shape_cast %66 : vector<1x8x8xbf16> to vector<8x8xbf16>
    %c0_34 = arith.constant 0 : index
    %c0_35 = arith.constant 0 : index
    %c80 = arith.constant 80 : index
    %68 = vector.load %arg3[%c0_34, %c0_35, %c80] : memref<1x8x96xbf16, #tpu.memory_space<vmem>>, vector<1x8x8xbf16>
    %69 = vector.shape_cast %68 : vector<1x8x8xbf16> to vector<8x8xbf16>
    %70 = arith.extf %65 : vector<8x8xbf16> to vector<8x8xf32>
    %cst_36 = arith.constant 0.353553385 : f32
    %71 = vector.broadcast %cst_36 : f32 to vector<8x8xf32>
    %72 = arith.mulf %70, %71 : vector<8x8xf32>
    %73 = arith.truncf %72 : vector<8x8xf32> to vector<8x8xbf16>
    %cst_37 = arith.constant dense<0.000000e+00> : vector<8x8xf32>
    %74 = tpu.matmul %73, %67, %cst_37 {dimension_numbers = #tpu.dot_dimension_numbers<[1], [1], [0], [0], [0, 0, 1, 0], [], []>} : vector<8x8xbf16>, vector<8x8xbf16>, vector<8x8xf32> -> vector<8x8xf32>
    %75 = tpu.iota {dimensions = array<i32: 1>} : vector<8x8xi32>
    %c5_i32_38 = arith.constant 5 : i32
    %76 = vector.broadcast %c5_i32_38 : i32 to vector<8x8xi32>
    %77 = arith.cmpi slt, %75, %76 : vector<8x8xi32>
    %cst_39 = arith.constant 0xFF800000 : f32
    %78 = vector.broadcast %cst_39 : f32 to vector<8x8xf32>
    %79 = arith.select %77, %74, %78 : vector<8x8xi1>, vector<8x8xf32>
    %cst_40 = arith.constant dense<0xFF800000> : vector<8xf32>
    %80 = vector.multi_reduction <maximumf>, %79, %cst_40 [1] : vector<8x8xf32> to vector<8xf32>
    %81 = vector.shape_cast %80 : vector<8xf32> to vector<8x1xf32>
    %82 = vector.broadcast %81 : vector<8x1xf32> to vector<8x8xf32>
    %83 = arith.subf %79, %82 : vector<8x8xf32>
    %84 = math.exp %83 : vector<8x8xf32>
    %cst_41 = arith.constant dense<0.000000e+00> : vector<8xf32>
    %85 = vector.multi_reduction <add>, %84, %cst_41 [1] : vector<8x8xf32> to vector<8xf32>
    %86 = vector.shape_cast %85 : vector<8xf32> to vector<8x1xf32>
    %87 = arith.truncf %84 : vector<8x8xf32> to vector<8x8xbf16>
    %cst_42 = arith.constant dense<0.000000e+00> : vector<8x8xf32>
    %88 = tpu.matmul %87, %69, %cst_42 {dimension_numbers = #tpu.dot_dimension_numbers<[1], [0], [0], [1], [0, 0, 1, 1], [], []>} : vector<8x8xbf16>, vector<8x8xbf16>, vector<8x8xf32> -> vector<8x8xf32>
    %89 = tpu.reciprocal %86 {approx = true} : vector<8x1xf32> -> vector<8x1xf32>
    %90 = vector.broadcast %89 : vector<8x1xf32> to vector<8x8xf32>
    %91 = arith.mulf %88, %90 : vector<8x8xf32>
    %92 = arith.truncf %91 : vector<8x8xf32> to vector<8x8xbf16>
    %c0_43 = arith.constant 0 : index
    %c0_44 = arith.constant 0 : index
    %c16_45 = arith.constant 16 : index
    %93 = vector.load %arg4[%c0_43, %c0_44, %c16_45] : memref<1x8x32xbf16, #tpu.memory_space<vmem>>, vector<1x8x8xbf16>
    %94 = vector.shape_cast %93 : vector<1x8x8xbf16> to vector<8x8xbf16>
    %95 = vector.shape_cast %92 : vector<8x8xbf16> to vector<1x8x8xbf16>
    tpu.vector_store %arg4[%c0_43, %c0_44, %c16_45], %95 {strides = array<i32>} : memref<1x8x32xbf16, #tpu.memory_space<vmem>>, vector<1x8x8xbf16>,
    %c0_46 = arith.constant 0 : index
    %c0_47 = arith.constant 0 : index
    %c24 = arith.constant 24 : index
    %96 = vector.load %arg2[%c0_46, %c0_47, %c24] : memref<1x8x96xbf16, #tpu.memory_space<vmem>>, vector<1x8x8xbf16>
    %97 = vector.shape_cast %96 : vector<1x8x8xbf16> to vector<8x8xbf16>
    %c0_48 = arith.constant 0 : index
    %c0_49 = arith.constant 0 : index
    %c56 = arith.constant 56 : index
    %98 = vector.load %arg3[%c0_48, %c0_49, %c56] : memref<1x8x96xbf16, #tpu.memory_space<vmem>>, vector<1x8x8xbf16>
    %99 = vector.shape_cast %98 : vector<1x8x8xbf16> to vector<8x8xbf16>
    %c0_50 = arith.constant 0 : index
    %c0_51 = arith.constant 0 : index
    %c88 = arith.constant 88 : index
    %100 = vector.load %arg3[%c0_50, %c0_51, %c88] : memref<1x8x96xbf16, #tpu.memory_space<vmem>>, vector<1x8x8xbf16>
    %101 = vector.shape_cast %100 : vector<1x8x8xbf16> to vector<8x8xbf16>
    %102 = arith.extf %97 : vector<8x8xbf16> to vector<8x8xf32>
    %cst_52 = arith.constant 0.353553385 : f32
    %103 = vector.broadcast %cst_52 : f32 to vector<8x8xf32>
    %104 = arith.mulf %102, %103 : vector<8x8xf32>
    %105 = arith.truncf %104 : vector<8x8xf32> to vector<8x8xbf16>
    %cst_53 = arith.constant dense<0.000000e+00> : vector<8x8xf32>
    %106 = tpu.matmul %105, %99, %cst_53 {dimension_numbers = #tpu.dot_dimension_numbers<[1], [1], [0], [0], [0, 0, 1, 0], [], []>} : vector<8x8xbf16>, vector<8x8xbf16>, vector<8x8xf32> -> vector<8x8xf32>
    %107 = tpu.iota {dimensions = array<i32: 1>} : vector<8x8xi32>
    %c5_i32_54 = arith.constant 5 : i32
    %108 = vector.broadcast %c5_i32_54 : i32 to vector<8x8xi32>
    %109 = arith.cmpi slt, %107, %108 : vector<8x8xi32>
    %cst_55 = arith.constant 0xFF800000 : f32
    %110 = vector.broadcast %cst_55 : f32 to vector<8x8xf32>
    %111 = arith.select %109, %106, %110 : vector<8x8xi1>, vector<8x8xf32>
    %cst_56 = arith.constant dense<0xFF800000> : vector<8xf32>
    %112 = vector.multi_reduction <maximumf>, %111, %cst_56 [1] : vector<8x8xf32> to vector<8xf32>
    %113 = vector.shape_cast %112 : vector<8xf32> to vector<8x1xf32>
    %114 = vector.broadcast %113 : vector<8x1xf32> to vector<8x8xf32>
    %115 = arith.subf %111, %114 : vector<8x8xf32>
    %116 = math.exp %115 : vector<8x8xf32>
    %cst_57 = arith.constant dense<0.000000e+00> : vector<8xf32>
    %117 = vector.multi_reduction <add>, %116, %cst_57 [1] : vector<8x8xf32> to vector<8xf32>
    %118 = vector.shape_cast %117 : vector<8xf32> to vector<8x1xf32>
    %119 = arith.truncf %116 : vector<8x8xf32> to vector<8x8xbf16>
    %cst_58 = arith.constant dense<0.000000e+00> : vector<8x8xf32>
    %120 = tpu.matmul %119, %101, %cst_58 {dimension_numbers = #tpu.dot_dimension_numbers<[1], [0], [0], [1], [0, 0, 1, 1], [], []>} : vector<8x8xbf16>, vector<8x8xbf16>, vector<8x8xf32> -> vector<8x8xf32>
    %121 = tpu.reciprocal %118 {approx = true} : vector<8x1xf32> -> vector<8x1xf32>
    %122 = vector.broadcast %121 : vector<8x1xf32> to vector<8x8xf32>
    %123 = arith.mulf %120, %122 : vector<8x8xf32>
    %124 = arith.truncf %123 : vector<8x8xf32> to vector<8x8xbf16>
    %c0_59 = arith.constant 0 : index
    %c0_60 = arith.constant 0 : index
    %c24_61 = arith.constant 24 : index
    %125 = vector.load %arg4[%c0_59, %c0_60, %c24_61] : memref<1x8x32xbf16, #tpu.memory_space<vmem>>, vector<1x8x8xbf16>
    %126 = vector.shape_cast %125 : vector<1x8x8xbf16> to vector<8x8xbf16>
    %127 = vector.shape_cast %124 : vector<8x8xbf16> to vector<1x8x8xbf16>
    tpu.vector_store %arg4[%c0_59, %c0_60, %c24_61], %127 {strides = array<i32>} : memref<1x8x32xbf16, #tpu.memory_space<vmem>>, vector<1x8x8xbf16>,
    return
  }
  func.func @transform_0(%arg0: i32, %arg1: i32) -> (i32, i32, i32) {
    %c0_i32 = arith.constant 0 : i32
    %c0_i32_0 = arith.constant 0 : i32
    return %arg0, %arg1, %c0_i32 : i32, i32, i32
  }
  func.func @transform_1(%arg0: i32, %arg1: i32) -> (i32, i32, i32) {
    %c0_i32 = arith.constant 0 : i32
    %c0_i32_0 = arith.constant 0 : i32
    %c0_i32_1 = arith.constant 0 : i32
    return %arg0, %c0_i32, %c0_i32_0 : i32, i32, i32
  }
  func.func @transform_2(%arg0: i32, %arg1: i32) -> (i32, i32, i32) {
    %c0_i32 = arith.constant 0 : i32
    %c0_i32_0 = arith.constant 0 : i32
    return %arg0, %arg1, %c0_i32 : i32, i32, i32
  }
}

module attributes {stable_mosaic.version = 11 : i64} {
  func.func @_ln_matmul_kernel(%arg0: i32, %arg1: i32, %arg2: memref<16x32xbf16, #tpu.memory_space<vmem>>, %arg3: memref<1x32xf32, #tpu.memory_space<vmem>>, %arg4: memref<1x32xf32, #tpu.memory_space<vmem>>, %arg5: memref<32x96xbf16, #tpu.memory_space<vmem>>, %arg6: memref<1x96xbf16, #tpu.memory_space<vmem>>, %arg7: memref<16x96xbf16, #tpu.memory_space<vmem>>, %arg8: memref<16x32xbf16, #tpu.memory_space<vmem>>) attributes {dimension_semantics = [#tpu.dimension_semantics<parallel>, #tpu.dimension_semantics<arbitrary>], iteration_bounds = array<i64: 1, 1>, scalar_prefetch = 0 : i64, scratch_operands = 1 : i64, tpu.core_type = #tpu.core_type<tc>, window_params = [{transform_indices = @transform_0, window_bounds = array<i64: 16, 32>}, {pipeline_mode = #tpu.pipeline_mode<synchronous>, transform_indices = @transform_1, window_bounds = array<i64: 1, 32>}, {pipeline_mode = #tpu.pipeline_mode<synchronous>, transform_indices = @transform_2, window_bounds = array<i64: 1, 32>}, {transform_indices = @transform_3, window_bounds = array<i64: 32, 96>}, {transform_indices = @transform_4, window_bounds = array<i64: 1, 96>}, {transform_indices = @transform_5, window_bounds = array<i64: 16, 96>}]} {
    %c0_i32 = arith.constant 0 : i32
    %0 = arith.cmpi eq, %arg1, %c0_i32 : i32
    %1 = arith.extui %0 : i1 to i32
    %c0_i32_0 = arith.constant 0 : i32
    %2 = arith.cmpi ne, %1, %c0_i32_0 : i32
    scf.if %2 {
      %c0_8 = arith.constant 0 : index
      %c0_9 = arith.constant 0 : index
      %12 = vector.load %arg2[%c0_8, %c0_9] : memref<16x32xbf16, #tpu.memory_space<vmem>>, vector<16x32xbf16>
      %13 = arith.extf %12 : vector<16x32xbf16> to vector<16x32xf32>
      %cst_10 = arith.constant dense<0.000000e+00> : vector<16xf32>
      %14 = vector.multi_reduction <add>, %13, %cst_10 [1] : vector<16x32xf32> to vector<16xf32>
      %15 = vector.shape_cast %14 : vector<16xf32> to vector<16x1xf32>
      %cst_11 = arith.constant 3.200000e+01 : f32
      %16 = vector.broadcast %cst_11 : f32 to vector<16x1xf32>
      %17 = arith.divf %15, %16 : vector<16x1xf32>
      %18 = vector.broadcast %17 : vector<16x1xf32> to vector<16x32xf32>
      %19 = arith.subf %13, %18 : vector<16x32xf32>
      %20 = arith.mulf %19, %19 : vector<16x32xf32>
      %cst_12 = arith.constant dense<0.000000e+00> : vector<16xf32>
      %21 = vector.multi_reduction <add>, %20, %cst_12 [1] : vector<16x32xf32> to vector<16xf32>
      %22 = vector.shape_cast %21 : vector<16xf32> to vector<16x1xf32>
      %cst_13 = arith.constant 3.200000e+01 : f32
      %23 = vector.broadcast %cst_13 : f32 to vector<16x1xf32>
      %24 = arith.divf %22, %23 : vector<16x1xf32>
      %25 = vector.broadcast %17 : vector<16x1xf32> to vector<16x32xf32>
      %26 = arith.subf %13, %25 : vector<16x32xf32>
      %cst_14 = arith.constant 9.99999974E-6 : f32
      %27 = vector.broadcast %cst_14 : f32 to vector<16x1xf32>
      %28 = arith.addf %24, %27 : vector<16x1xf32>
      %29 = math.rsqrt %28 : vector<16x1xf32>
      %30 = vector.broadcast %29 : vector<16x1xf32> to vector<16x32xf32>
      %31 = arith.mulf %26, %30 : vector<16x32xf32>
      %c0_15 = arith.constant 0 : index
      %c0_16 = arith.constant 0 : index
      %32 = vector.load %arg3[%c0_15, %c0_16] : memref<1x32xf32, #tpu.memory_space<vmem>>, vector<1x32xf32>
      %33 = vector.broadcast %32 : vector<1x32xf32> to vector<16x32xf32>
      %34 = arith.mulf %31, %33 : vector<16x32xf32>
      %c0_17 = arith.constant 0 : index
      %c0_18 = arith.constant 0 : index
      %35 = vector.load %arg4[%c0_17, %c0_18] : memref<1x32xf32, #tpu.memory_space<vmem>>, vector<1x32xf32>
      %36 = vector.broadcast %35 : vector<1x32xf32> to vector<16x32xf32>
      %37 = arith.addf %34, %36 : vector<16x32xf32>
      %38 = arith.truncf %37 : vector<16x32xf32> to vector<16x32xbf16>
      %c0_19 = arith.constant 0 : index
      %c0_20 = arith.constant 0 : index
      %39 = vector.load %arg8[%c0_19, %c0_20] : memref<16x32xbf16, #tpu.memory_space<vmem>>, vector<16x32xbf16>
      tpu.vector_store %arg8[%c0_19, %c0_20], %38 {strides = array<i32>} : memref<16x32xbf16, #tpu.memory_space<vmem>>, vector<16x32xbf16>,
    } else {
    }
    %c0 = arith.constant 0 : index
    %c0_1 = arith.constant 0 : index
    %3 = vector.load %arg8[%c0, %c0_1] : memref<16x32xbf16, #tpu.memory_space<vmem>>, vector<16x32xbf16>
    %c0_2 = arith.constant 0 : index
    %c0_3 = arith.constant 0 : index
    %4 = vector.load %arg5[%c0_2, %c0_3] : memref<32x96xbf16, #tpu.memory_space<vmem>>, vector<32x96xbf16>
    %cst = arith.constant dense<0.000000e+00> : vector<16x96xf32>
    %5 = tpu.matmul %3, %4, %cst {dimension_numbers = #tpu.dot_dimension_numbers<[1], [0], [0], [1], [0, 0, 1, 1], [], []>} : vector<16x32xbf16>, vector<32x96xbf16>, vector<16x96xf32> -> vector<16x96xf32>
    %c0_4 = arith.constant 0 : index
    %c0_5 = arith.constant 0 : index
    %6 = vector.load %arg6[%c0_4, %c0_5] : memref<1x96xbf16, #tpu.memory_space<vmem>>, vector<1x96xbf16>
    %7 = arith.extf %6 : vector<1x96xbf16> to vector<1x96xf32>
    %8 = vector.broadcast %7 : vector<1x96xf32> to vector<16x96xf32>
    %9 = arith.addf %5, %8 : vector<16x96xf32>
    %10 = arith.truncf %9 : vector<16x96xf32> to vector<16x96xbf16>
    %c0_6 = arith.constant 0 : index
    %c0_7 = arith.constant 0 : index
    %11 = vector.load %arg7[%c0_6, %c0_7] : memref<16x96xbf16, #tpu.memory_space<vmem>>, vector<16x96xbf16>
    tpu.vector_store %arg7[%c0_6, %c0_7], %10 {strides = array<i32>} : memref<16x96xbf16, #tpu.memory_space<vmem>>, vector<16x96xbf16>,
    return
  }
  func.func @transform_0(%arg0: i32, %arg1: i32) -> (i32, i32) {
    %c0_i32 = arith.constant 0 : i32
    %c0_i32_0 = arith.constant 0 : i32
    return %arg0, %c0_i32 : i32, i32
  }
  func.func @transform_1(%arg0: i32, %arg1: i32) -> (i32, i32) {
    %c0_i32 = arith.constant 0 : i32
    %c0_i32_0 = arith.constant 0 : i32
    %c0_i32_1 = arith.constant 0 : i32
    return %c0_i32, %c0_i32_0 : i32, i32
  }
  func.func @transform_2(%arg0: i32, %arg1: i32) -> (i32, i32) {
    %c0_i32 = arith.constant 0 : i32
    %c0_i32_0 = arith.constant 0 : i32
    %c0_i32_1 = arith.constant 0 : i32
    return %c0_i32, %c0_i32_0 : i32, i32
  }
  func.func @transform_3(%arg0: i32, %arg1: i32) -> (i32, i32) {
    %c0_i32 = arith.constant 0 : i32
    %c0_i32_0 = arith.constant 0 : i32
    return %c0_i32, %arg1 : i32, i32
  }
  func.func @transform_4(%arg0: i32, %arg1: i32) -> (i32, i32) {
    %c0_i32 = arith.constant 0 : i32
    %c0_i32_0 = arith.constant 0 : i32
    return %c0_i32, %arg1 : i32, i32
  }
  func.func @transform_5(%arg0: i32, %arg1: i32) -> (i32, i32) {
    %c0_i32 = arith.constant 0 : i32
    return %arg0, %arg1 : i32, i32
  }
}

module attributes {stable_mosaic.version = 11 : i64} {
  func.func @_matmul_bias_res_kernel(%arg0: i32, %arg1: i32, %arg2: i32, %arg3: memref<16x32xbf16, #tpu.memory_space<vmem>>, %arg4: memref<32x32xbf16, #tpu.memory_space<vmem>>, %arg5: memref<1x32xbf16, #tpu.memory_space<vmem>>, %arg6: memref<16x32xbf16, #tpu.memory_space<vmem>>, %arg7: memref<16x32xbf16, #tpu.memory_space<vmem>>, %arg8: memref<16x32xf32, #tpu.memory_space<vmem>>) attributes {dimension_semantics = [#tpu.dimension_semantics<parallel>, #tpu.dimension_semantics<parallel>, #tpu.dimension_semantics<arbitrary>], iteration_bounds = array<i64: 1, 1, 1>, scalar_prefetch = 0 : i64, scratch_operands = 1 : i64, tpu.core_type = #tpu.core_type<tc>, window_params = [{transform_indices = @transform_0, window_bounds = array<i64: 16, 32>}, {transform_indices = @transform_1, window_bounds = array<i64: 32, 32>}, {transform_indices = @transform_2, window_bounds = array<i64: 1, 32>}, {transform_indices = @transform_3, window_bounds = array<i64: 16, 32>}, {transform_indices = @transform_4, window_bounds = array<i64: 16, 32>}]} {
    %c0_i32 = arith.constant 0 : i32
    %0 = arith.cmpi eq, %arg2, %c0_i32 : i32
    %1 = arith.extui %0 : i1 to i32
    %c0_i32_0 = arith.constant 0 : i32
    %2 = arith.cmpi ne, %1, %c0_i32_0 : i32
    scf.if %2 {
      %cst_10 = arith.constant 0.000000e+00 : f32
      %12 = vector.broadcast %cst_10 : f32 to vector<16x32xf32>
      %c0_11 = arith.constant 0 : index
      %c0_12 = arith.constant 0 : index
      %13 = vector.load %arg8[%c0_11, %c0_12] : memref<16x32xf32, #tpu.memory_space<vmem>>, vector<16x32xf32>
      tpu.vector_store %arg8[%c0_11, %c0_12], %12 {strides = array<i32>} : memref<16x32xf32, #tpu.memory_space<vmem>>, vector<16x32xf32>,
    } else {
    }
    %c0 = arith.constant 0 : index
    %c0_1 = arith.constant 0 : index
    %3 = vector.load %arg8[%c0, %c0_1] : memref<16x32xf32, #tpu.memory_space<vmem>>, vector<16x32xf32>
    %c0_2 = arith.constant 0 : index
    %c0_3 = arith.constant 0 : index
    %4 = vector.load %arg3[%c0_2, %c0_3] : memref<16x32xbf16, #tpu.memory_space<vmem>>, vector<16x32xbf16>
    %c0_4 = arith.constant 0 : index
    %c0_5 = arith.constant 0 : index
    %5 = vector.load %arg4[%c0_4, %c0_5] : memref<32x32xbf16, #tpu.memory_space<vmem>>, vector<32x32xbf16>
    %cst = arith.constant dense<0.000000e+00> : vector<16x32xf32>
    %6 = tpu.matmul %4, %5, %cst {dimension_numbers = #tpu.dot_dimension_numbers<[1], [0], [0], [1], [0, 0, 1, 1], [], []>} : vector<16x32xbf16>, vector<32x32xbf16>, vector<16x32xf32> -> vector<16x32xf32>
    %7 = arith.addf %3, %6 : vector<16x32xf32>
    %c0_6 = arith.constant 0 : index
    %c0_7 = arith.constant 0 : index
    %8 = vector.load %arg8[%c0_6, %c0_7] : memref<16x32xf32, #tpu.memory_space<vmem>>, vector<16x32xf32>
    tpu.vector_store %arg8[%c0_6, %c0_7], %7 {strides = array<i32>} : memref<16x32xf32, #tpu.memory_space<vmem>>, vector<16x32xf32>,
    %c0_i32_8 = arith.constant 0 : i32
    %9 = arith.cmpi eq, %arg2, %c0_i32_8 : i32
    %10 = arith.extui %9 : i1 to i32
    %c0_i32_9 = arith.constant 0 : i32
    %11 = arith.cmpi ne, %10, %c0_i32_9 : i32
    scf.if %11 {
      %c0_10 = arith.constant 0 : index
      %c0_11 = arith.constant 0 : index
      %12 = vector.load %arg8[%c0_10, %c0_11] : memref<16x32xf32, #tpu.memory_space<vmem>>, vector<16x32xf32>
      %c0_12 = arith.constant 0 : index
      %c0_13 = arith.constant 0 : index
      %13 = vector.load %arg5[%c0_12, %c0_13] : memref<1x32xbf16, #tpu.memory_space<vmem>>, vector<1x32xbf16>
      %14 = arith.extf %13 : vector<1x32xbf16> to vector<1x32xf32>
      %15 = vector.broadcast %14 : vector<1x32xf32> to vector<16x32xf32>
      %16 = arith.addf %12, %15 : vector<16x32xf32>
      %c0_14 = arith.constant 0 : index
      %c0_15 = arith.constant 0 : index
      %17 = vector.load %arg6[%c0_14, %c0_15] : memref<16x32xbf16, #tpu.memory_space<vmem>>, vector<16x32xbf16>
      %18 = arith.extf %17 : vector<16x32xbf16> to vector<16x32xf32>
      %19 = arith.addf %16, %18 : vector<16x32xf32>
      %20 = arith.truncf %19 : vector<16x32xf32> to vector<16x32xbf16>
      %c0_16 = arith.constant 0 : index
      %c0_17 = arith.constant 0 : index
      %21 = vector.load %arg7[%c0_16, %c0_17] : memref<16x32xbf16, #tpu.memory_space<vmem>>, vector<16x32xbf16>
      tpu.vector_store %arg7[%c0_16, %c0_17], %20 {strides = array<i32>} : memref<16x32xbf16, #tpu.memory_space<vmem>>, vector<16x32xbf16>,
    } else {
    }
    return
  }
  func.func @transform_0(%arg0: i32, %arg1: i32, %arg2: i32) -> (i32, i32) {
    %c0_i32 = arith.constant 0 : i32
    return %arg0, %arg2 : i32, i32
  }
  func.func @transform_1(%arg0: i32, %arg1: i32, %arg2: i32) -> (i32, i32) {
    %c0_i32 = arith.constant 0 : i32
    return %arg2, %arg1 : i32, i32
  }
  func.func @transform_2(%arg0: i32, %arg1: i32, %arg2: i32) -> (i32, i32) {
    %c0_i32 = arith.constant 0 : i32
    %c0_i32_0 = arith.constant 0 : i32
    return %c0_i32, %arg1 : i32, i32
  }
  func.func @transform_3(%arg0: i32, %arg1: i32, %arg2: i32) -> (i32, i32) {
    %c0_i32 = arith.constant 0 : i32
    return %arg0, %arg1 : i32, i32
  }
  func.func @transform_4(%arg0: i32, %arg1: i32, %arg2: i32) -> (i32, i32) {
    %c0_i32 = arith.constant 0 : i32
    return %arg0, %arg1 : i32, i32
  }
}

module attributes {stable_mosaic.version = 11 : i64} {
  func.func @_ln_matmul_kernel(%arg0: i32, %arg1: i32, %arg2: memref<16x32xbf16, #tpu.memory_space<vmem>>, %arg3: memref<1x32xf32, #tpu.memory_space<vmem>>, %arg4: memref<1x32xf32, #tpu.memory_space<vmem>>, %arg5: memref<32x128xbf16, #tpu.memory_space<vmem>>, %arg6: memref<1x128xbf16, #tpu.memory_space<vmem>>, %arg7: memref<16x128xbf16, #tpu.memory_space<vmem>>, %arg8: memref<16x32xbf16, #tpu.memory_space<vmem>>) attributes {dimension_semantics = [#tpu.dimension_semantics<parallel>, #tpu.dimension_semantics<arbitrary>], iteration_bounds = array<i64: 1, 1>, scalar_prefetch = 0 : i64, scratch_operands = 1 : i64, tpu.core_type = #tpu.core_type<tc>, window_params = [{transform_indices = @transform_0, window_bounds = array<i64: 16, 32>}, {pipeline_mode = #tpu.pipeline_mode<synchronous>, transform_indices = @transform_1, window_bounds = array<i64: 1, 32>}, {pipeline_mode = #tpu.pipeline_mode<synchronous>, transform_indices = @transform_2, window_bounds = array<i64: 1, 32>}, {transform_indices = @transform_3, window_bounds = array<i64: 32, 128>}, {transform_indices = @transform_4, window_bounds = array<i64: 1, 128>}, {transform_indices = @transform_5, window_bounds = array<i64: 16, 128>}]} {
    %c0_i32 = arith.constant 0 : i32
    %0 = arith.cmpi eq, %arg1, %c0_i32 : i32
    %1 = arith.extui %0 : i1 to i32
    %c0_i32_0 = arith.constant 0 : i32
    %2 = arith.cmpi ne, %1, %c0_i32_0 : i32
    scf.if %2 {
      %c0_10 = arith.constant 0 : index
      %c0_11 = arith.constant 0 : index
      %20 = vector.load %arg2[%c0_10, %c0_11] : memref<16x32xbf16, #tpu.memory_space<vmem>>, vector<16x32xbf16>
      %21 = arith.extf %20 : vector<16x32xbf16> to vector<16x32xf32>
      %cst_12 = arith.constant dense<0.000000e+00> : vector<16xf32>
      %22 = vector.multi_reduction <add>, %21, %cst_12 [1] : vector<16x32xf32> to vector<16xf32>
      %23 = vector.shape_cast %22 : vector<16xf32> to vector<16x1xf32>
      %cst_13 = arith.constant 3.200000e+01 : f32
      %24 = vector.broadcast %cst_13 : f32 to vector<16x1xf32>
      %25 = arith.divf %23, %24 : vector<16x1xf32>
      %26 = vector.broadcast %25 : vector<16x1xf32> to vector<16x32xf32>
      %27 = arith.subf %21, %26 : vector<16x32xf32>
      %28 = arith.mulf %27, %27 : vector<16x32xf32>
      %cst_14 = arith.constant dense<0.000000e+00> : vector<16xf32>
      %29 = vector.multi_reduction <add>, %28, %cst_14 [1] : vector<16x32xf32> to vector<16xf32>
      %30 = vector.shape_cast %29 : vector<16xf32> to vector<16x1xf32>
      %cst_15 = arith.constant 3.200000e+01 : f32
      %31 = vector.broadcast %cst_15 : f32 to vector<16x1xf32>
      %32 = arith.divf %30, %31 : vector<16x1xf32>
      %33 = vector.broadcast %25 : vector<16x1xf32> to vector<16x32xf32>
      %34 = arith.subf %21, %33 : vector<16x32xf32>
      %cst_16 = arith.constant 9.99999974E-6 : f32
      %35 = vector.broadcast %cst_16 : f32 to vector<16x1xf32>
      %36 = arith.addf %32, %35 : vector<16x1xf32>
      %37 = math.rsqrt %36 : vector<16x1xf32>
      %38 = vector.broadcast %37 : vector<16x1xf32> to vector<16x32xf32>
      %39 = arith.mulf %34, %38 : vector<16x32xf32>
      %c0_17 = arith.constant 0 : index
      %c0_18 = arith.constant 0 : index
      %40 = vector.load %arg3[%c0_17, %c0_18] : memref<1x32xf32, #tpu.memory_space<vmem>>, vector<1x32xf32>
      %41 = vector.broadcast %40 : vector<1x32xf32> to vector<16x32xf32>
      %42 = arith.mulf %39, %41 : vector<16x32xf32>
      %c0_19 = arith.constant 0 : index
      %c0_20 = arith.constant 0 : index
      %43 = vector.load %arg4[%c0_19, %c0_20] : memref<1x32xf32, #tpu.memory_space<vmem>>, vector<1x32xf32>
      %44 = vector.broadcast %43 : vector<1x32xf32> to vector<16x32xf32>
      %45 = arith.addf %42, %44 : vector<16x32xf32>
      %46 = arith.truncf %45 : vector<16x32xf32> to vector<16x32xbf16>
      %c0_21 = arith.constant 0 : index
      %c0_22 = arith.constant 0 : index
      %47 = vector.load %arg8[%c0_21, %c0_22] : memref<16x32xbf16, #tpu.memory_space<vmem>>, vector<16x32xbf16>
      tpu.vector_store %arg8[%c0_21, %c0_22], %46 {strides = array<i32>} : memref<16x32xbf16, #tpu.memory_space<vmem>>, vector<16x32xbf16>,
    } else {
    }
    %c0 = arith.constant 0 : index
    %c0_1 = arith.constant 0 : index
    %3 = vector.load %arg8[%c0, %c0_1] : memref<16x32xbf16, #tpu.memory_space<vmem>>, vector<16x32xbf16>
    %c0_2 = arith.constant 0 : index
    %c0_3 = arith.constant 0 : index
    %4 = vector.load %arg5[%c0_2, %c0_3] : memref<32x128xbf16, #tpu.memory_space<vmem>>, vector<32x128xbf16>
    %cst = arith.constant dense<0.000000e+00> : vector<16x128xf32>
    %5 = tpu.matmul %3, %4, %cst {dimension_numbers = #tpu.dot_dimension_numbers<[1], [0], [0], [1], [0, 0, 1, 1], [], []>} : vector<16x32xbf16>, vector<32x128xbf16>, vector<16x128xf32> -> vector<16x128xf32>
    %c0_4 = arith.constant 0 : index
    %c0_5 = arith.constant 0 : index
    %6 = vector.load %arg6[%c0_4, %c0_5] : memref<1x128xbf16, #tpu.memory_space<vmem>>, vector<1x128xbf16>
    %7 = arith.extf %6 : vector<1x128xbf16> to vector<1x128xf32>
    %8 = vector.broadcast %7 : vector<1x128xf32> to vector<16x128xf32>
    %9 = arith.addf %5, %8 : vector<16x128xf32>
    %cst_6 = arith.constant 1.702000e+00 : f32
    %10 = vector.broadcast %cst_6 : f32 to vector<16x128xf32>
    %11 = arith.mulf %10, %9 : vector<16x128xf32>
    %12 = arith.negf %11 : vector<16x128xf32>
    %13 = math.exp %12 : vector<16x128xf32>
    %cst_7 = arith.constant 1.000000e+00 : f32
    %14 = vector.broadcast %cst_7 : f32 to vector<16x128xf32>
    %15 = arith.addf %14, %13 : vector<16x128xf32>
    %16 = arith.divf %14, %15 : vector<16x128xf32>
    %17 = arith.mulf %9, %16 : vector<16x128xf32>
    %18 = arith.truncf %17 : vector<16x128xf32> to vector<16x128xbf16>
    %c0_8 = arith.constant 0 : index
    %c0_9 = arith.constant 0 : index
    %19 = vector.load %arg7[%c0_8, %c0_9] : memref<16x128xbf16, #tpu.memory_space<vmem>>, vector<16x128xbf16>
    tpu.vector_store %arg7[%c0_8, %c0_9], %18 {strides = array<i32>} : memref<16x128xbf16, #tpu.memory_space<vmem>>, vector<16x128xbf16>,
    return
  }
  func.func @transform_0(%arg0: i32, %arg1: i32) -> (i32, i32) {
    %c0_i32 = arith.constant 0 : i32
    %c0_i32_0 = arith.constant 0 : i32
    return %arg0, %c0_i32 : i32, i32
  }
  func.func @transform_1(%arg0: i32, %arg1: i32) -> (i32, i32) {
    %c0_i32 = arith.constant 0 : i32
    %c0_i32_0 = arith.constant 0 : i32
    %c0_i32_1 = arith.constant 0 : i32
    return %c0_i32, %c0_i32_0 : i32, i32
  }
  func.func @transform_2(%arg0: i32, %arg1: i32) -> (i32, i32) {
    %c0_i32 = arith.constant 0 : i32
    %c0_i32_0 = arith.constant 0 : i32
    %c0_i32_1 = arith.constant 0 : i32
    return %c0_i32, %c0_i32_0 : i32, i32
  }
  func.func @transform_3(%arg0: i32, %arg1: i32) -> (i32, i32) {
    %c0_i32 = arith.constant 0 : i32
    %c0_i32_0 = arith.constant 0 : i32
    return %c0_i32, %arg1 : i32, i32
  }
  func.func @transform_4(%arg0: i32, %arg1: i32) -> (i32, i32) {
    %c0_i32 = arith.constant 0 : i32
    %c0_i32_0 = arith.constant 0 : i32
    return %c0_i32, %arg1 : i32, i32
  }
  func.func @transform_5(%arg0: i32, %arg1: i32) -> (i32, i32) {
    %c0_i32 = arith.constant 0 : i32
    return %arg0, %arg1 : i32, i32
  }
}

module attributes {stable_mosaic.version = 11 : i64} {
  func.func @_matmul_bias_res_kernel(%arg0: i32, %arg1: i32, %arg2: i32, %arg3: memref<16x128xbf16, #tpu.memory_space<vmem>>, %arg4: memref<128x32xbf16, #tpu.memory_space<vmem>>, %arg5: memref<1x32xbf16, #tpu.memory_space<vmem>>, %arg6: memref<16x32xbf16, #tpu.memory_space<vmem>>, %arg7: memref<16x32xbf16, #tpu.memory_space<vmem>>, %arg8: memref<16x32xf32, #tpu.memory_space<vmem>>) attributes {dimension_semantics = [#tpu.dimension_semantics<parallel>, #tpu.dimension_semantics<parallel>, #tpu.dimension_semantics<arbitrary>], iteration_bounds = array<i64: 1, 1, 1>, scalar_prefetch = 0 : i64, scratch_operands = 1 : i64, tpu.core_type = #tpu.core_type<tc>, window_params = [{transform_indices = @transform_0, window_bounds = array<i64: 16, 128>}, {transform_indices = @transform_1, window_bounds = array<i64: 128, 32>}, {transform_indices = @transform_2, window_bounds = array<i64: 1, 32>}, {transform_indices = @transform_3, window_bounds = array<i64: 16, 32>}, {transform_indices = @transform_4, window_bounds = array<i64: 16, 32>}]} {
    %c0_i32 = arith.constant 0 : i32
    %0 = arith.cmpi eq, %arg2, %c0_i32 : i32
    %1 = arith.extui %0 : i1 to i32
    %c0_i32_0 = arith.constant 0 : i32
    %2 = arith.cmpi ne, %1, %c0_i32_0 : i32
    scf.if %2 {
      %cst_10 = arith.constant 0.000000e+00 : f32
      %12 = vector.broadcast %cst_10 : f32 to vector<16x32xf32>
      %c0_11 = arith.constant 0 : index
      %c0_12 = arith.constant 0 : index
      %13 = vector.load %arg8[%c0_11, %c0_12] : memref<16x32xf32, #tpu.memory_space<vmem>>, vector<16x32xf32>
      tpu.vector_store %arg8[%c0_11, %c0_12], %12 {strides = array<i32>} : memref<16x32xf32, #tpu.memory_space<vmem>>, vector<16x32xf32>,
    } else {
    }
    %c0 = arith.constant 0 : index
    %c0_1 = arith.constant 0 : index
    %3 = vector.load %arg8[%c0, %c0_1] : memref<16x32xf32, #tpu.memory_space<vmem>>, vector<16x32xf32>
    %c0_2 = arith.constant 0 : index
    %c0_3 = arith.constant 0 : index
    %4 = vector.load %arg3[%c0_2, %c0_3] : memref<16x128xbf16, #tpu.memory_space<vmem>>, vector<16x128xbf16>
    %c0_4 = arith.constant 0 : index
    %c0_5 = arith.constant 0 : index
    %5 = vector.load %arg4[%c0_4, %c0_5] : memref<128x32xbf16, #tpu.memory_space<vmem>>, vector<128x32xbf16>
    %cst = arith.constant dense<0.000000e+00> : vector<16x32xf32>
    %6 = tpu.matmul %4, %5, %cst {dimension_numbers = #tpu.dot_dimension_numbers<[1], [0], [0], [1], [0, 0, 1, 1], [], []>} : vector<16x128xbf16>, vector<128x32xbf16>, vector<16x32xf32> -> vector<16x32xf32>
    %7 = arith.addf %3, %6 : vector<16x32xf32>
    %c0_6 = arith.constant 0 : index
    %c0_7 = arith.constant 0 : index
    %8 = vector.load %arg8[%c0_6, %c0_7] : memref<16x32xf32, #tpu.memory_space<vmem>>, vector<16x32xf32>
    tpu.vector_store %arg8[%c0_6, %c0_7], %7 {strides = array<i32>} : memref<16x32xf32, #tpu.memory_space<vmem>>, vector<16x32xf32>,
    %c0_i32_8 = arith.constant 0 : i32
    %9 = arith.cmpi eq, %arg2, %c0_i32_8 : i32
    %10 = arith.extui %9 : i1 to i32
    %c0_i32_9 = arith.constant 0 : i32
    %11 = arith.cmpi ne, %10, %c0_i32_9 : i32
    scf.if %11 {
      %c0_10 = arith.constant 0 : index
      %c0_11 = arith.constant 0 : index
      %12 = vector.load %arg8[%c0_10, %c0_11] : memref<16x32xf32, #tpu.memory_space<vmem>>, vector<16x32xf32>
      %c0_12 = arith.constant 0 : index
      %c0_13 = arith.constant 0 : index
      %13 = vector.load %arg5[%c0_12, %c0_13] : memref<1x32xbf16, #tpu.memory_space<vmem>>, vector<1x32xbf16>
      %14 = arith.extf %13 : vector<1x32xbf16> to vector<1x32xf32>
      %15 = vector.broadcast %14 : vector<1x32xf32> to vector<16x32xf32>
      %16 = arith.addf %12, %15 : vector<16x32xf32>
      %c0_14 = arith.constant 0 : index
      %c0_15 = arith.constant 0 : index
      %17 = vector.load %arg6[%c0_14, %c0_15] : memref<16x32xbf16, #tpu.memory_space<vmem>>, vector<16x32xbf16>
      %18 = arith.extf %17 : vector<16x32xbf16> to vector<16x32xf32>
      %19 = arith.addf %16, %18 : vector<16x32xf32>
      %20 = arith.truncf %19 : vector<16x32xf32> to vector<16x32xbf16>
      %c0_16 = arith.constant 0 : index
      %c0_17 = arith.constant 0 : index
      %21 = vector.load %arg7[%c0_16, %c0_17] : memref<16x32xbf16, #tpu.memory_space<vmem>>, vector<16x32xbf16>
      tpu.vector_store %arg7[%c0_16, %c0_17], %20 {strides = array<i32>} : memref<16x32xbf16, #tpu.memory_space<vmem>>, vector<16x32xbf16>,
    } else {
    }
    return
  }
  func.func @transform_0(%arg0: i32, %arg1: i32, %arg2: i32) -> (i32, i32) {
    %c0_i32 = arith.constant 0 : i32
    return %arg0, %arg2 : i32, i32
  }
  func.func @transform_1(%arg0: i32, %arg1: i32, %arg2: i32) -> (i32, i32) {
    %c0_i32 = arith.constant 0 : i32
    return %arg2, %arg1 : i32, i32
  }
  func.func @transform_2(%arg0: i32, %arg1: i32, %arg2: i32) -> (i32, i32) {
    %c0_i32 = arith.constant 0 : i32
    %c0_i32_0 = arith.constant 0 : i32
    return %c0_i32, %arg1 : i32, i32
  }
  func.func @transform_3(%arg0: i32, %arg1: i32, %arg2: i32) -> (i32, i32) {
    %c0_i32 = arith.constant 0 : i32
    return %arg0, %arg1 : i32, i32
  }
  func.func @transform_4(%arg0: i32, %arg1: i32, %arg2: i32) -> (i32, i32) {
    %c0_i32 = arith.constant 0 : i32
    return %arg0, %arg1 : i32, i32
  }
}

module attributes {stable_mosaic.version = 11 : i64} {
  func.func @_ln_matmul_kernel(%arg0: i32, %arg1: i32, %arg2: memref<2x32xbf16, #tpu.memory_space<vmem>>, %arg3: memref<1x32xf32, #tpu.memory_space<vmem>>, %arg4: memref<1x32xf32, #tpu.memory_space<vmem>>, %arg5: memref<32x16xbf16, #tpu.memory_space<vmem>>, %arg6: memref<1x16xbf16, #tpu.memory_space<vmem>>, %arg7: memref<2x16xbf16, #tpu.memory_space<vmem>>, %arg8: memref<2x32xbf16, #tpu.memory_space<vmem>>) attributes {dimension_semantics = [#tpu.dimension_semantics<parallel>, #tpu.dimension_semantics<arbitrary>], iteration_bounds = array<i64: 1, 1>, scalar_prefetch = 0 : i64, scratch_operands = 1 : i64, tpu.core_type = #tpu.core_type<tc>, window_params = [{transform_indices = @transform_0, window_bounds = array<i64: 2, 32>}, {pipeline_mode = #tpu.pipeline_mode<synchronous>, transform_indices = @transform_1, window_bounds = array<i64: 1, 32>}, {pipeline_mode = #tpu.pipeline_mode<synchronous>, transform_indices = @transform_2, window_bounds = array<i64: 1, 32>}, {transform_indices = @transform_3, window_bounds = array<i64: 32, 16>}, {transform_indices = @transform_4, window_bounds = array<i64: 1, 16>}, {transform_indices = @transform_5, window_bounds = array<i64: 2, 16>}]} {
    %c0_i32 = arith.constant 0 : i32
    %0 = arith.cmpi eq, %arg1, %c0_i32 : i32
    %1 = arith.extui %0 : i1 to i32
    %c0_i32_0 = arith.constant 0 : i32
    %2 = arith.cmpi ne, %1, %c0_i32_0 : i32
    scf.if %2 {
      %c0_8 = arith.constant 0 : index
      %c0_9 = arith.constant 0 : index
      %12 = vector.load %arg2[%c0_8, %c0_9] : memref<2x32xbf16, #tpu.memory_space<vmem>>, vector<2x32xbf16>
      %13 = arith.extf %12 : vector<2x32xbf16> to vector<2x32xf32>
      %cst_10 = arith.constant dense<0.000000e+00> : vector<2xf32>
      %14 = vector.multi_reduction <add>, %13, %cst_10 [1] : vector<2x32xf32> to vector<2xf32>
      %15 = vector.shape_cast %14 : vector<2xf32> to vector<2x1xf32>
      %cst_11 = arith.constant 3.200000e+01 : f32
      %16 = vector.broadcast %cst_11 : f32 to vector<2x1xf32>
      %17 = arith.divf %15, %16 : vector<2x1xf32>
      %18 = vector.broadcast %17 : vector<2x1xf32> to vector<2x32xf32>
      %19 = arith.subf %13, %18 : vector<2x32xf32>
      %20 = arith.mulf %19, %19 : vector<2x32xf32>
      %cst_12 = arith.constant dense<0.000000e+00> : vector<2xf32>
      %21 = vector.multi_reduction <add>, %20, %cst_12 [1] : vector<2x32xf32> to vector<2xf32>
      %22 = vector.shape_cast %21 : vector<2xf32> to vector<2x1xf32>
      %cst_13 = arith.constant 3.200000e+01 : f32
      %23 = vector.broadcast %cst_13 : f32 to vector<2x1xf32>
      %24 = arith.divf %22, %23 : vector<2x1xf32>
      %25 = vector.broadcast %17 : vector<2x1xf32> to vector<2x32xf32>
      %26 = arith.subf %13, %25 : vector<2x32xf32>
      %cst_14 = arith.constant 9.99999974E-6 : f32
      %27 = vector.broadcast %cst_14 : f32 to vector<2x1xf32>
      %28 = arith.addf %24, %27 : vector<2x1xf32>
      %29 = math.rsqrt %28 : vector<2x1xf32>
      %30 = vector.broadcast %29 : vector<2x1xf32> to vector<2x32xf32>
      %31 = arith.mulf %26, %30 : vector<2x32xf32>
      %c0_15 = arith.constant 0 : index
      %c0_16 = arith.constant 0 : index
      %32 = vector.load %arg3[%c0_15, %c0_16] : memref<1x32xf32, #tpu.memory_space<vmem>>, vector<1x32xf32>
      %33 = vector.broadcast %32 : vector<1x32xf32> to vector<2x32xf32>
      %34 = arith.mulf %31, %33 : vector<2x32xf32>
      %c0_17 = arith.constant 0 : index
      %c0_18 = arith.constant 0 : index
      %35 = vector.load %arg4[%c0_17, %c0_18] : memref<1x32xf32, #tpu.memory_space<vmem>>, vector<1x32xf32>
      %36 = vector.broadcast %35 : vector<1x32xf32> to vector<2x32xf32>
      %37 = arith.addf %34, %36 : vector<2x32xf32>
      %38 = arith.truncf %37 : vector<2x32xf32> to vector<2x32xbf16>
      %c0_19 = arith.constant 0 : index
      %c0_20 = arith.constant 0 : index
      %39 = vector.load %arg8[%c0_19, %c0_20] : memref<2x32xbf16, #tpu.memory_space<vmem>>, vector<2x32xbf16>
      tpu.vector_store %arg8[%c0_19, %c0_20], %38 {strides = array<i32>} : memref<2x32xbf16, #tpu.memory_space<vmem>>, vector<2x32xbf16>,
    } else {
    }
    %c0 = arith.constant 0 : index
    %c0_1 = arith.constant 0 : index
    %3 = vector.load %arg8[%c0, %c0_1] : memref<2x32xbf16, #tpu.memory_space<vmem>>, vector<2x32xbf16>
    %c0_2 = arith.constant 0 : index
    %c0_3 = arith.constant 0 : index
    %4 = vector.load %arg5[%c0_2, %c0_3] : memref<32x16xbf16, #tpu.memory_space<vmem>>, vector<32x16xbf16>
    %cst = arith.constant dense<0.000000e+00> : vector<2x16xf32>
    %5 = tpu.matmul %3, %4, %cst {dimension_numbers = #tpu.dot_dimension_numbers<[1], [0], [0], [1], [0, 0, 1, 1], [], []>} : vector<2x32xbf16>, vector<32x16xbf16>, vector<2x16xf32> -> vector<2x16xf32>
    %c0_4 = arith.constant 0 : index
    %c0_5 = arith.constant 0 : index
    %6 = vector.load %arg6[%c0_4, %c0_5] : memref<1x16xbf16, #tpu.memory_space<vmem>>, vector<1x16xbf16>
    %7 = arith.extf %6 : vector<1x16xbf16> to vector<1x16xf32>
    %8 = vector.broadcast %7 : vector<1x16xf32> to vector<2x16xf32>
    %9 = arith.addf %5, %8 : vector<2x16xf32>
    %10 = arith.truncf %9 : vector<2x16xf32> to vector<2x16xbf16>
    %c0_6 = arith.constant 0 : index
    %c0_7 = arith.constant 0 : index
    %11 = vector.load %arg7[%c0_6, %c0_7] : memref<2x16xbf16, #tpu.memory_space<vmem>>, vector<2x16xbf16>
    tpu.vector_store %arg7[%c0_6, %c0_7], %10 {strides = array<i32>} : memref<2x16xbf16, #tpu.memory_space<vmem>>, vector<2x16xbf16>,
    return
  }
  func.func @transform_0(%arg0: i32, %arg1: i32) -> (i32, i32) {
    %c0_i32 = arith.constant 0 : i32
    %c0_i32_0 = arith.constant 0 : i32
    return %arg0, %c0_i32 : i32, i32
  }
  func.func @transform_1(%arg0: i32, %arg1: i32) -> (i32, i32) {
    %c0_i32 = arith.constant 0 : i32
    %c0_i32_0 = arith.constant 0 : i32
    %c0_i32_1 = arith.constant 0 : i32
    return %c0_i32, %c0_i32_0 : i32, i32
  }
  func.func @transform_2(%arg0: i32, %arg1: i32) -> (i32, i32) {
    %c0_i32 = arith.constant 0 : i32
    %c0_i32_0 = arith.constant 0 : i32
    %c0_i32_1 = arith.constant 0 : i32
    return %c0_i32, %c0_i32_0 : i32, i32
  }
  func.func @transform_3(%arg0: i32, %arg1: i32) -> (i32, i32) {
    %c0_i32 = arith.constant 0 : i32
    %c0_i32_0 = arith.constant 0 : i32
    return %c0_i32, %arg1 : i32, i32
  }
  func.func @transform_4(%arg0: i32, %arg1: i32) -> (i32, i32) {
    %c0_i32 = arith.constant 0 : i32
    %c0_i32_0 = arith.constant 0 : i32
    return %c0_i32, %arg1 : i32, i32
  }
  func.func @transform_5(%arg0: i32, %arg1: i32) -> (i32, i32) {
    %c0_i32 = arith.constant 0 : i32
    return %arg0, %arg1 : i32, i32
  }
}

</mosaic_0001>

<bundles_post_ra>
// kernel: _lambda_.13
= control target key start
LH: loop header
LB: loop body
LE: loop exit
PB: predicated region body
PF: predicated region fallthrough
CT: control target
= control target key end

     0   :  { %vm18_vm0 = vcmask 261120   ;;  %v282_v21 = vmov 0.0   ;;  %vm195_vm1 = vcmask 257024   ;;  %s360_s1 = inlined_call_operand.vmem [shape: bf16[256,32], index: 1, kind: input, shape index: {}]   ;;  %s361_s0 = inlined_call_operand.vmem [shape: bf16[8,256], index: 0, kind: input, shape index: {}]   ;;  %s362_s2 = inlined_call_operand.vmem [shape: bf16[1,32], index: 2, kind: input, shape index: {}]   ;;  %s363_s3 = inlined_call_operand.vmem [shape: bf16[8,32], index: 3, kind: output, shape index: {}]  }
   0x1   :  { %v272_v0 = vld [vmem:[%s360_s1 + $0x38] sm:$0xff]  ;;  %v271_v2 = vld [vmem:[%s360_s1 + $0x30] sm:$0xff]  ;;  %v270_v4 = vld [vmem:[%s360_s1 + $0x28] sm:$0xff]  ;;  %19 = vst.msk [vmem:[#allocation2] sm:$0xff] %vm18_vm0, %v282_v21 }
   0x2   :  { %v280_v1 = vld [vmem:[%s360_s1 + $0x78] sm:$0xff]  ;;  %157 = vmatpush.bf16.msra.mxu0 %v272_v0  ;;  %v279_v3 = vld [vmem:[%s360_s1 + $0x70] sm:$0xff]  ;;  %v278_v5 = vld [vmem:[%s360_s1 + $0x68] sm:$0xff] }
   0x3   :  { %170 = vmatpush.bf16.msra.mxu1 %v280_v1  ;;  %v269_v6 = vld [vmem:[%s360_s1 + $0x20] sm:$0xff]  ;;  %v268_v8 = vld [vmem:[%s360_s1 + $0x18] sm:$0xff]  ;;  %v267_v10 = vld [vmem:[%s360_s1 + $0x10] sm:$0xff] }
   0x4   :  { %v277_v7 = vld [vmem:[%s360_s1 + $0x60] sm:$0xff]  ;;  %v276_v9 = vld [vmem:[%s360_s1 + $0x58] sm:$0xff]  ;;  %v275_v11 = vld [vmem:[%s360_s1 + $0x50] sm:$0xff] }
   0x5   :  { %v266_v12 = vld [vmem:[%s360_s1 + $0x8] sm:$0xff]  ;;  %v21_v14 = vld [vmem:[%s361_s0] sm:$0xff] }
   0x6   :  { %158 = vmatpush.bf16.msra.mxu0 %v271_v2  ;;  %v274_v13 = vld [vmem:[%s360_s1 + $0x48] sm:$0xff]  ;;  %v55_v15 = vunpack.c.l.b16 %v21_v14  ;;  %v56_v16 = vunpack.c.h.b16 %v21_v14  ;;  %v265_v17 = vld [vmem:[%s360_s1] sm:$0xff] }
   0x7   :  { %171 = vmatpush.bf16.msra.mxu1 %v279_v3  ;;  %v273_v18 = vld [vmem:[%s360_s1 + $0x40] sm:$0xff] }
   0x8   :  { %v57_v19 = vpack.c.b16 %v55_v15, %v55_v15  ;;  %v58_v20 = vpack.c.b16 %v56_v16, %v56_v16  ;;  %v20_v23 = vld [vmem:[#allocation2] sm:$0xff] }
   0x9   :  { %v190_v26 = vld [vmem:[%s362_s2] sm:$0x1] }
   0xa   :  { %159 = vmatpush.bf16.msra.mxu0 %v270_v4  ;;  %v191_v28 = vunpack.c.l.bf16 %v190_v26 }
   0xb   :  { %172 = vmatpush.bf16.msra.mxu1 %v278_v5 }
   0xc   :  { %v192_v31 = vperm.slane %v191_v28, 0 }
   0xe   :  { %160 = vmatpush.bf16.msra.mxu0 %v269_v6 }
   0xf   :  { %173 = vmatpush.bf16.msra.mxu1 %v277_v7 }
  0x12   :  { %161 = vmatpush.bf16.msra.mxu0 %v268_v8 }
  0x13   :  { %174 = vmatpush.bf16.msra.mxu1 %v276_v9 }
  0x16   :  { %162 = vmatpush.bf16.msra.mxu0 %v267_v10 }
  0x17   :  { %175 = vmatpush.bf16.msra.mxu1 %v275_v11 }
  0x1a   :  { %163 = vmatpush.bf16.msra.mxu0 %v266_v12 }
  0x1b   :  { %176 = vmatpush.bf16.msra.mxu1 %v274_v13 }
  0x1e   :  { %164 = vmatpush.bf16.msra.mxu0 %v265_v17 }
  0x1f   :  { %177 = vmatpush.bf16.msra.mxu1 %v273_v18 }
  0x21   :  { %165 = vmatmul.bf16.vlgmr.msra.gmra.mxu0 %v57_v19 }
  0x22   :  { %178 = vmatmul.bf16.vlgmr.msra.gmra.mxu1 %v58_v20 }
  0x9e   :  { %v166_v22 = vpop.f32.mrf.mxu0 }
  0x9f   :  { %v179_v24 = vpop.f32.mrf.mxu1 }
  0xa0   :  { %v180_v25 = vadd.f32 %v179_v24, %v166_v22 }
  0xa2   :  { %v183_v27 = vadd.f32 %v180_v25, %v20_v23 }
  0xa4   :  { %185 = vst.msk [vmem:[#allocation2] sm:$0xff] %vm18_vm0, %v183_v27 }
  0xa6   :  { %v168_v29 = vpop.f32.mrf.mxu0 }
  0xa7   :  { %v181_v30 = vpop.f32.mrf.mxu1 }
  0xab   :  { %v189_v32 = vld [vmem:[#allocation2] sm:$0xff] }
  0xac   :  { %v193_v33 = vadd.f32 %v192_v31, %v189_v32 }
  0xae   :  { %v194_v34 = vpack.c.bf16 %v193_v33, %v193_v33 }
  0xb0   :  { %196 = vst.msk [vmem:[%s363_s3] sm:$0xf] %vm195_vm1, %v194_v34 }

// kernel: _lambda_.14
= control target key start
LH: loop header
LB: loop body
LE: loop exit
PB: predicated region body
PF: predicated region fallthrough
CT: control target
= control target key end

     0   :  { %s352_s15 = smov 0   ;;  %s387_s0 = inlined_call_operand.vmem [shape: bf16[2,8,32], index: 0, kind: input, shape index: {}]   ;;  %s388_s1 = inlined_call_operand.vmem [shape: bf16[8,32], index: 1, kind: input, shape index: {}]   ;;  %s389_s2 = inlined_call_operand.vmem [shape: f32[1,32], index: 2, kind: input, shape index: {}]   ;;  %s390_s3 = inlined_call_operand.vmem [shape: f32[1,32], index: 3, kind: input, shape index: {}]   ;;  %s391_s4 = inlined_call_operand.vmem [shape: bf16[2,8,32], index: 4, kind: output, shape index: {}]  }
   0x1 LB: > { %s294_s16 = sadd.s32 4294967295, %s324_s15   ;;  %p298_p0 = scmp.ge.s32.totalorder %s324_s15, 1  ;;  %s324_s15 = sphi %s352_s15, %s14_s15  }
   0x2   : > { %p161_p1 = scmp.lt.s32.totalorder %s324_s15, 3 }
   0x4   : > { %p162_p2 = pnand %p298_p0, %p161_p1 }
   0x5   : > { %p185_p3 = scmp.lt.s32.totalorder (!%p162_p2), %s294_s16, 1 }
   0x6   : > { %165 = sbr.rel (%p162_p2) target bundleno = 290 (0x122), region = 36 }
   0xb   : > { %s393_s16 = smov (!%p185_p3, %s294_s16), 1  ;;  %v195_v0 = vld [vmem:[%s388_s1] sm:$0xf]  ;;  %vm198_vm0 = vcmask 261120   ;;  %v326_v6 = vmov 32.0   ;;  %vm239_vm5 = vcmask 257024  }
   0xc   : > { %s299_s19 = sshll.u32 %s393_s16, 2  ;;  %v196_v1 = vunpack.c.l.bf16 %v195_v0  ;;  %314 = vrcp.f32 %v326_v6  ;;  %v312_v27 = vld [vmem:[%s389_s2] ss:$0 sm:$0xff] }
   0xd   : > { %s188_s22 = scalar_lea.vmem %s387_s0, %s299_s19  ;;  %v313_v29 = vld [vmem:[%s390_s3] ss:$0 sm:$0xff]  ;;  %s192_s29 = scalar_lea.vmem %s391_s4, %s299_s19 }
   0xe   : > { %v193_v2 = vld [vmem:[%s188_s22] sm:$0xf] }
   0xf   : > { %v194_v3 = vunpack.c.l.bf16 %v193_v2 }
  0x11   : > { %v197_v4 = vadd.f32 %v196_v1, %v194_v3 }
  0x12   : > { %v315_v7 = vpop.eup %314 }
  0x13   : > { %v199_v5 = vsel %vm198_vm0, %v197_v4, 0.0  ;;  %v203_v8 = vmul.f32 32.0, %v315_v7  ;;  %vm207_vm1 = vweird.f32 %v315_v7 }
  0x14   : > { %200 = vadd.xlane.f32.xlu0 %v199_v5 }
  0x15   : > { %v204_v9 = vsub.f32 1.0, %v203_v8 }
  0x17   : > { %v205_v10 = vmul.f32 %v315_v7, %v204_v9 }
  0x19   : > { %v206_v11 = vadd.f32 %v315_v7, %v205_v10 }
  0x1b   : > { %v208_v12 = vsel %vm207_vm1, %v315_v7, %v206_v11 }
  0x87   : > { %v201_v13 = vpop.xlane.xlu0 %200 }
  0x88   : > { %v209_v14 = vmul.f32 %v208_v12, %v201_v13 }
  0x8a   : > { %v210_v15 = vsub.f32 %v197_v4, %v209_v14 }
  0x8c   : > { %v211_v16 = vmul.f32 %v210_v15, %v210_v15 }
  0x8e   : > { %v212_v17 = vsel %vm198_vm0, %v211_v16, 0.0 }
  0x8f   : > { %213 = vadd.xlane.f32.xlu0 %v212_v17 }
 0x102   : > { %v214_v18 = vpop.xlane.xlu0 %213 }
 0x103   : > { %v215_v19 = vmul.f32 %v214_v18, %v208_v12 }
 0x105   : > { %v216_v20 = vadd.f32 1e-05, %v215_v19 }
 0x107   : > { %316 = vrsqrt.f32 %v216_v20  ;;  %vm223_vm3 = vweird.f32 %v216_v20 }
 0x10d   : > { %v317_v21 = vpop.eup %316 }
 0x10e   : > { %v218_v22 = vmul.f32 %v317_v21, %v216_v20  ;;  %vm224_vm2 = vweird.f32 %v317_v21 }
 0x10f   : > { %vm225_vm4 = vmor %vm223_vm3, %vm224_vm2 }
 0x110   : > { %v219_v23 = vmul.f32 %v317_v21, %v218_v22 }
 0x112   : > { %v220_v24 = vmul.f32 0.5, %v219_v23 }
 0x114   : > { %v221_v25 = vsub.f32 1.5, %v220_v24 }
 0x116   : > { %v222_v26 = vmul.f32 %v317_v21, %v221_v25 }
 0x118   : > { %v226_v28 = vsel %vm225_vm4, %v317_v21, %v222_v26 }
 0x119   : > { %v227_v30 = vmul.f32 %v226_v28, %v210_v15 }
 0x11b   : > { %v232_v31 = vmul.f32 %v312_v27, %v227_v30 }
 0x11d   : > { %v237_v32 = vadd.f32 %v313_v29, %v232_v31 }
 0x11f   : > { %v238_v33 = vpack.c.bf16 %v237_v32, %v237_v32 }
 0x121   : > { %240 = vst.msk [vmem:[%s192_s29] sm:$0xf] %vm239_vm5, %v238_v33 }
 0x122 PF: > { %s14_s15 = sadd.s32 1, %s324_s15  }
 0x123   : > { %p11_p4 = scmp.ge.s32.totalorder %s14_s15, 4  }
 0x125   :  { %13 = sbr.rel (!%p11_p4) target bundleno = 1 (0x1), region = 66 }

// kernel: _lambda_.15
= control target key start
LH: loop header
LB: loop body
LE: loop exit
PB: predicated region body
PF: predicated region fallthrough
CT: control target
= control target key end

     0   :  { %vm29_vm0 = vcmask 261120   ;;  %v180_v5 = vmov 32.0   ;;  %vm95_vm6 = vcmask 257024   ;;  %vm144_vm9 = vcmask 781312   ;;  %s240_s0 = inlined_call_operand.vmem [shape: bf16[16,32], index: 0, kind: input, shape index: {}]   ;;  %s241_s1 = inlined_call_operand.vmem [shape: f32[1,32], index: 1, kind: input, shape index: {}]   ;;  %s242_s2 = inlined_call_operand.vmem [shape: f32[1,32], index: 2, kind: input, shape index: {}]   ;;  %s243_s3 = inlined_call_operand.vmem [shape: bf16[32,96], index: 3, kind: input, shape index: {}]   ;;  %s244_s4 = inlined_call_operand.vmem [shape: bf16[1,96], index: 4, kind: input, shape index: {}]   ;;  %s245_s5 = inlined_call_operand.vmem [shape: bf16[16,96], index: 5, kind: output, shape index: {}]  }
   0x1   :  { %v168_v0 = vld [vmem:[%s240_s0] sm:$0xff]   ;;  %174 = vrcp.f32 %v180_v5  ;;  %v166_v25 = vld [vmem:[%s243_s3 + $0x8] sm:$0xff] }
   0x2   :  { %v169_v1 = vunpack.c.l.bf16 %v168_v0  ;;  %v170_v3 = vunpack.c.h.bf16 %v168_v0  ;;  %134 = vmatpush.bf16.msra.mxu0 %v166_v25  ;;  %v165_v28 = vld [vmem:[%s243_s3] sm:$0xff] }
   0x3   :  { %v172_v38 = vld [vmem:[%s241_s1] ss:$0 sm:$0xff] }
   0x4   :  { %v30_v2 = vsel %vm29_vm0, %v169_v1, 0.0  ;;  %v33_v4 = vsel %vm29_vm0, %v170_v3, 0.0  ;;  %v173_v41 = vld [vmem:[%s242_s2] ss:$0 sm:$0xff] }
   0x5   :  { %31 = vadd.xlane.f32.xlu0 %v30_v2  ;;  %v104_v55 = vld [vmem:[%s244_s4] sm:$0x1] }
   0x6   :  { %135 = vmatpush.bf16.msra.mxu0 %v165_v28  ;;  %v105_v56 = vunpack.c.l.bf16 %v104_v55 }
   0x7   :  { %v175_v6 = vpop.eup %174 }
   0x8   :  { %v37_v7 = vmul.f32 32.0, %v175_v6  ;;  %vm41_vm1 = vweird.f32 %v175_v6  ;;  %v106_v57 = vperm.slane %v105_v56, 0 }
   0xa   :  { %v38_v8 = vsub.f32 1.0, %v37_v7 }
   0xc   :  { %v39_v9 = vmul.f32 %v175_v6, %v38_v8 }
   0xd   :  { %34 = vadd.xlane.f32.xlu0 %v33_v4 }
   0xe   :  { %v40_v10 = vadd.f32 %v175_v6, %v39_v9 }
  0x10   :  { %v42_v11 = vsel %vm41_vm1, %v175_v6, %v40_v10 }
  0x78   :  { %v32_v12 = vpop.xlane.xlu0 %31 }
  0x79   :  { %v43_v13 = vmul.f32 %v42_v11, %v32_v12 }
  0x7b   :  { %v45_v14 = vsub.f32 %v169_v1, %v43_v13 }
  0x7d   :  { %v47_v15 = vmul.f32 %v45_v14, %v45_v14 }
  0x7f   :  { %v49_v16 = vsel %vm29_vm0, %v47_v15, 0.0 }
  0x80   :  { %50 = vadd.xlane.f32.xlu1 %v49_v16  ;;  %v35_v17 = vpop.xlane.xlu0 %34 }
  0x81   :  { %v44_v18 = vmul.f32 %v42_v11, %v35_v17 }
  0x83   :  { %v46_v19 = vsub.f32 %v170_v3, %v44_v18 }
  0x85   :  { %v48_v20 = vmul.f32 %v46_v19, %v46_v19 }
  0x87   :  { %v52_v21 = vsel %vm29_vm0, %v48_v20, 0.0 }
  0x88   :  { %53 = vadd.xlane.f32.xlu1 %v52_v21 }
  0xf3   :  { %v51_v22 = vpop.xlane.xlu1 %50 }
  0xf4   :  { %v55_v23 = vmul.f32 %v51_v22, %v42_v11 }
  0xf6   :  { %v57_v24 = vadd.f32 1e-05, %v55_v23 }
  0xf8   :  { %176 = vrsqrt.f32 %v57_v24  ;;  %vm65_vm3 = vweird.f32 %v57_v24 }
  0xfb   :  { %v54_v26 = vpop.xlane.xlu1 %53 }
  0xfc   :  { %v56_v27 = vmul.f32 %v54_v26, %v42_v11 }
  0xfe   :  { %v177_v29 = vpop.eup %176  ;;  %v58_v30 = vadd.f32 1e-05, %v56_v27 }
  0xff   :  { %v60_v31 = vmul.f32 %v177_v29, %v57_v24  ;;  %vm66_vm2 = vweird.f32 %v177_v29 }
 0x100   :  { %178 = vrsqrt.f32 %v58_v30  ;;  %vm67_vm4 = vmor %vm65_vm3, %vm66_vm2  ;;  %vm75_vm7 = vweird.f32 %v58_v30 }
 0x101   :  { %v61_v32 = vmul.f32 %v177_v29, %v60_v31 }
 0x103   :  { %v62_v33 = vmul.f32 0.5, %v61_v32 }
 0x105   :  { %v63_v34 = vsub.f32 1.5, %v62_v33 }
 0x106   :  { %v179_v35 = vpop.eup %178 }
 0x107   :  { %v64_v36 = vmul.f32 %v177_v29, %v63_v34  ;;  %v70_v37 = vmul.f32 %v179_v35, %v58_v30  ;;  %vm76_vm5 = vweird.f32 %v179_v35 }
 0x108   :  { %vm77_vm8 = vmor %vm75_vm7, %vm76_vm5 }
 0x109   :  { %v68_v39 = vsel %vm67_vm4, %v177_v29, %v64_v36  ;;  %v71_v40 = vmul.f32 %v179_v35, %v70_v37 }
 0x10a   :  { %v79_v42 = vmul.f32 %v68_v39, %v45_v14 }
 0x10b   :  { %v72_v43 = vmul.f32 0.5, %v71_v40 }
 0x10c   :  { %v85_v44 = vmul.f32 %v172_v38, %v79_v42 }
 0x10d   :  { %v73_v45 = vsub.f32 1.5, %v72_v43 }
 0x10e   :  { %v91_v46 = vadd.f32 %v173_v41, %v85_v44 }
 0x10f   :  { %v74_v47 = vmul.f32 %v179_v35, %v73_v45 }
 0x110   :  { %v93_v48 = vpack.c.bf16 %v91_v46, %v91_v46 }
 0x111   :  { %v78_v49 = vsel %vm77_vm8, %v179_v35, %v74_v47 }
 0x112   :  { %96 = vst.msk [vmem:[#allocation2] sm:$0xf] %vm95_vm6, %v93_v48  ;;  %v80_v50 = vmul.f32 %v78_v49, %v46_v19 }
 0x114   :  { %v86_v51 = vmul.f32 %v172_v38, %v80_v50 }
 0x116   :  { %v92_v52 = vadd.f32 %v173_v41, %v86_v51 }
 0x118   :  { %v94_v53 = vpack.c.bf16 %v92_v52, %v92_v52 }
 0x11a   :  { %97 = vst.msk [vmem:[#allocation2 + $0x4] sm:$0xf] %vm95_vm6, %v94_v53 }
 0x121   :  { %v164_v54 = vld [vmem:[#allocation2] sm:$0xff] }
 0x122   :  { %163 = vmatmul.msk.bf16.vlgmr.msra.gmra.mxu0 %vm29_vm0, %v164_v54 }
 0x19f   :  { %v137_v58 = vpop.f32.mrf.mxu0 }
 0x1a0   :  { %v138_v59 = vadd.f32 %v137_v58, %v106_v57 }
 0x1a2   :  { %v142_v60 = vpack.c.bf16 %v138_v59, %v138_v59 }
 0x1a4   :  { %145 = vst.msk [vmem:[%s245_s5] sm:$0xf] %vm144_vm9, %v142_v60 }
 0x1a7   :  { %v139_v61 = vpop.f32.mrf.mxu0 }
 0x1a8   :  { %v140_v62 = vadd.f32 %v139_v61, %v106_v57 }
 0x1aa   :  { %v143_v63 = vpack.c.bf16 %v140_v62, %v140_v62 }
 0x1ac   :  { %146 = vst.msk [vmem:[%s245_s5 + $0x4] sm:$0xf] %vm144_vm9, %v143_v63 }

// kernel: _lambda_.16
= control target key start
LH: loop header
LB: loop body
LE: loop exit
PB: predicated region body
PF: predicated region fallthrough
CT: control target
= control target key end

     0   :  { %s689_s9 = smov 0   ;;  %s691_s10 = smov 0   ;;  %s781_s0 = inlined_call_operand.vmem [shape: bf16[2,8,96], index: 0, kind: input, shape index: {}, may-alias: {0,1}]   ;;  %s782_s1 = inlined_call_operand.vmem [shape: bf16[2,8,96], index: 1, kind: input, shape index: {}, may-alias: {0,1}]   ;;  %s783_s2 = inlined_call_operand.vmem [shape: bf16[2,8,32], index: 2, kind: output, shape index: {}]  }
   0x1   :  { %s693_s11 = smov 0  }
   0x2 LB: > { %s24_s12 = sadd.s32 1, %s654_s10  ;;  %p568_p0 = scmp.ge.s32.totalorder %s658_s11, 1  ;;  %s658_s11 = sphi %s693_s11, %s12_s11   ;;  %s654_s10 = sphi %s691_s10, %s785_s10   ;;  %s650_s9 = sphi %s689_s9, %s784_s9  }
   0x3   : > { %p26_p1 = scmp.ge.s32.totalorder %s24_s12, 2  ;;  %p139_p2 = scmp.lt.s32.totalorder %s658_s11, 3 }
   0x5   : > { %s787_s12 = smov (%p26_p1, %s24_s12), 0  ;;  %p140_p3 = pnand %p568_p0, %p139_p2 }
   0x6   : > { %p169_p4 = scmp.lt.s32.totalorder (!%p140_p3), %s650_s9, 1  ;;  %s660_s17 = smov (!%p140_p3), 96  }
   0x7   : > { %143 = sbr.rel (%p140_p3) target bundleno = 926 (0x39e), region = 28  ;;  %s661_s18 = smov (!%p140_p3), 88  }
   0x8   : > { %s662_s22 = smov (!%p140_p3), 120   ;;  %s663_s23 = smov (!%p140_p3), 72  }
   0x9   : > { %s664_s24 = smov (!%p140_p3), 104   ;;  %s665_s25 = smov (!%p140_p3), 64  }
   0xa   : > { %s666_s26 = smov (!%p140_p3), 80   ;;  %s667_s27 = smov (!%p140_p3), 112  }
   0xb   : > { %s668_s28 = smov (!%p140_p3), 56   ;;  %s669_s29 = smov (!%p140_p3), 40  }
   0xc   : > { %s789_s9 = smov (!%p169_p4, %s650_s9), 1  ;;  %vm198_vm0 = vcmask 64512   ;;  %v218_v36 = vlaneseq  ;;  %vm237_vm2 = vcmask 1043456   ;;  %s670_s30 = smov 48   ;;  %vm257_vm3 = vcmask 60416  }
   0xd   : > { %s707_s13 = sshll.u32 %s789_s9, 2  ;;  %s671_s3 = smov 8   ;;  %vm330_vm4 = vcmask 126016   ;;  %vm403_vm5 = vcmask 191616   ;;  %vm476_vm6 = vcmask 257216  }
   0xe   : > { %s713_s16 = scalar_lea.vmem %s782_s1, %s707_s13  ;;  %s721_s21 = scalar_lea.vmem %s781_s0, %s707_s13  ;;  %v738_v37 = vand.u32 127, %v218_v36 }
   0xf   : > { %v189_v0 = vld [vmem:[%s713_s16] sm:$0xf]  ;;  %s672_s4 = smov 24   ;;  %s186_s7 = scalar_lea.vmem %s783_s2, %s707_s13 }
  0x10   : > { %v260_v1 = vld [vmem:[%s713_s16] sm:$0xf]  ;;  %v194_v2 = vunpack.c.l.b16 %v189_v0  ;;  %vm220_vm1 = vcmp.lt.s32.totalorder %v738_v37, 5  ;;  %s673_s8 = smov 16  }
  0x11   : > { %v268_v3 = vunpack.c.l.b16 %v260_v1  ;;  %v259_v6 = vld [vmem:[%s721_s21] sm:$0xf] }
  0x12   : > { %v195_v4 = vpack.c.b16 %v194_v2, %v194_v2  ;;  %v261_v7 = vunpack.c.l.bf16 %v259_v6  ;;  %v406_v9 = vld [vmem:[%s713_s16] sm:$0xf] }
  0x13   : > { %v269_v5 = vpack.c.b16 %v268_v3, %v268_v3  ;;  %v414_v11 = vunpack.c.l.b16 %v406_v9  ;;  %v405_v12 = vld [vmem:[%s721_s21] sm:$0xf] }
  0x14   : > { %196 = vrot.lane.b32.xlu0 %v195_v4, %s660_s17  ;;  %v262_v8 = vmul.f32 0.35355338, %v261_v7  ;;  %v407_v14 = vunpack.c.l.bf16 %v405_v12  ;;  %v188_v17 = vld [vmem:[%s721_s21] sm:$0xf]  ;;  %232 = vrot.lane.b32.xlu2 %v195_v4, %s665_s25 }
  0x15   : > { %270 = vrot.lane.b32.xlu1 %v269_v5, %s661_s18  ;;  %v726_v13 = vpack.c.b16 %v414_v11, %v414_v11  ;;  %v190_v18 = vunpack.c.l.bf16 %v188_v17  ;;  %v333_v29 = vld [vmem:[%s713_s16] sm:$0xf] }
  0x16   : > { %v263_v10 = vpack.c.bf16 %v262_v8, %v262_v8  ;;  %v408_v15 = vmul.f32 0.35355338, %v407_v14  ;;  %v332_v30 = vld [vmem:[%s721_s21] sm:$0xf]  ;;  %v341_v31 = vunpack.c.l.b16 %v333_v29 }
  0x17   : > { %v191_v22 = vmul.f32 0.35355338, %v190_v18  ;;  %v334_v32 = vunpack.c.l.bf16 %v332_v30 }
  0x18   : > { %v409_v16 = vpack.c.bf16 %v408_v15, %v408_v15  ;;  %v342_v33 = vpack.c.b16 %v341_v31, %v341_v31 }
  0x19   : > { %v192_v24 = vpack.c.bf16 %v191_v22, %v191_v22  ;;  %v335_v34 = vmul.f32 0.35355338, %v334_v32 }
  0x1b   : > { %v336_v35 = vpack.c.bf16 %v335_v34, %v335_v34 }
  0x1c   : > { %343 = vrot.lane.b32.xlu2 %v342_v33, %s666_s26 }
  0x1d   : > { %265 = vrot.lane.b32.xlu1 %v263_v10, %s662_s22 }
  0x24   : > { %338 = vrot.lane.b32.xlu2 %v336_v35, %s667_s27 }
  0x25   : > { %416 = vrot.lane.b32.xlu1 %v726_v13, %s663_s23 }
  0x2d   : > { %411 = vrot.lane.b32.xlu1 %v409_v16, %s664_s24 }
  0x35   : > { %302 = vrot.lane.b32.xlu1 %v269_v5, %s668_s28 }
  0x6e   : > { %v233_v45 = vpop.permute.xlu2 %232 }
  0x6f   : > { %v239_v46 = vsel %vm237_vm2, %v233_v45, 0 }
  0x70   : > { %248 = vmatpush.bf16.msra.mxu1 %v239_v46 }
  0x76   : > { %v344_v51 = vpop.permute.xlu2 %343 }
  0x77   : > { %v349_v52 = vsel %vm198_vm0, %v344_v51, 0 }
  0x78   : > { %358 = vmatpush.bf16.xpose.msrb.mxu1 %v349_v52 }
  0x7e   : > { %v339_v59 = vpop.permute.xlu2 %338 }
  0x86   : > { %v197_v19 = vpop.permute.xlu0 %196 }
  0x87   : > { %v271_v20 = vpop.permute.xlu1 %270  ;;  %v203_v21 = vsel %vm198_vm0, %v197_v19, 0 }
  0x88   : > { %v276_v23 = vsel %vm198_vm0, %v271_v20, 0  ;;  %212 = vmatpush.bf16.xpose.msra.mxu0 %v203_v21 }
  0x89   : > { %285 = vmatpush.bf16.xpose.msra.mxu2 %v276_v23 }
  0x8f   : > { %572 = vmatmul.msk.bf16.vlgmr.msra.gmra.mxu0 %vm198_vm0, %v192_v24  ;;  %v266_v25 = vpop.permute.xlu1 %265 }
  0x90   : > { %574 = vmatmul.msk.bf16.vlgmr.msra.gmra.mxu2 %vm198_vm0, %v266_v25 }
  0x97   : > { %v417_v26 = vpop.permute.xlu1 %416 }
  0x98   : > { %v422_v27 = vsel %vm198_vm0, %v417_v26, 0 }
  0x99   : > { %431 = vmatpush.bf16.xpose.msrb.mxu0 %v422_v27 }
  0x9f   : > { %v412_v28 = vpop.permute.xlu1 %411 }
  0xa0   : > { %578 = vmatmul.msk.bf16.vlgmr.msrb.gmra.mxu0 %vm198_vm0, %v412_v28 }
  0xa7   : > { %v303_v60 = vpop.permute.xlu1 %302 }
  0xa8   : > { %v308_v61 = vsel %vm237_vm2, %v303_v60, 0 }
  0xa9   : > { %317 = vmatpush.bf16.msra.mxu3 %v308_v61 }
 0x10c   : > { %v214_v38 = vpop.f32.mrf.mxu0 }
 0x10d   : > { %v221_v39 = vsel %vm220_vm1, %v214_v38, -inf }
 0x10e   : > { %v222_v40 = vsel %vm198_vm0, %v221_v39, -inf }
 0x10f   : > { %223 = vmax.xlane.f32.xlu0 %v222_v40 }
 0x113   : > { %v287_v42 = vpop.f32.mrf.mxu2 }
 0x114   : > { %v216_v41 = vpop.f32.mrf.mxu0  ;;  %v291_v43 = vsel %vm220_vm1, %v287_v42, -inf }
 0x115   : > { %v292_v44 = vsel %vm198_vm0, %v291_v43, -inf }
 0x116   : > { %293 = vmax.xlane.f32.xlu2 %v292_v44 }
 0x11b   : > { %v289_v47 = vpop.f32.mrf.mxu2 }
 0x11d   : > { %v433_v48 = vpop.f32.mrf.mxu0 }
 0x11e   : > { %v437_v49 = vsel %vm220_vm1, %v433_v48, -inf }
 0x11f   : > { %v438_v50 = vsel %vm198_vm0, %v437_v49, -inf }
 0x120   : > { %439 = vmax.xlane.f32.xlu0 %v438_v50 }
 0x125   : > { %v435_v53 = vpop.f32.mrf.mxu0 }
 0x12e   : > { %448 = vrot.lane.b32.xlu2 %v726_v13, %s669_s29 }
 0x134   : > { %375 = vrot.lane.b32.xlu0 %v342_v33, %s670_s30 }
 0x182   : > { %v224_v54 = vpop.xlane.xlu0 %223 }
 0x183   : > { %v225_v55 = vsub.f32 %v221_v39, %v224_v54 }
 0x185   : > { %v226_v56 = vmul.f32 1.442695, %v225_v55 }
 0x187   : > { %620 = vpow2.f32 %v226_v56 }
 0x189   : > { %v294_v62 = vpop.xlane.xlu2 %293 }
 0x18a   : > { %v295_v63 = vsub.f32 %v291_v43, %v294_v62 }
 0x18c   : > { %v296_v0 = vmul.f32 1.442695, %v295_v63 }
 0x18d   : > { %v621_v57 = vpop.eup %620 }
 0x18e   : > { %v231_v58 = vpack.c.bf16 %v621_v57, %v621_v57  ;;  %622 = vpow2.f32 %v296_v0  ;;  %v228_v30 = vsel %vm198_vm0, %v621_v57, 0.0 }
 0x190   : > { %573 = vmatmul.msk.bf16.vlgmr.msra.gmra.mxu1 %vm198_vm0, %v231_v58 }
 0x191   : > { %v449_v1 = vpop.permute.xlu2 %448 }
 0x192   : > { %v454_v2 = vsel %vm237_vm2, %v449_v1, 0 }
 0x193   : > { %v440_v3 = vpop.xlane.xlu0 %439  ;;  %463 = vmatpush.bf16.msrb.mxu2 %v454_v2 }
 0x194   : > { %v623_v4 = vpop.eup %622  ;;  %v441_v5 = vsub.f32 %v437_v49, %v440_v3 }
 0x195   : > { %v301_v6 = vpack.c.bf16 %v623_v4, %v623_v4  ;;  %v298_v7 = vsel %vm198_vm0, %v623_v4, 0.0 }
 0x196   : > { %v442_v8 = vmul.f32 1.442695, %v441_v5  ;;  %299 = vadd.xlane.f32.xlu0 %v298_v7 }
 0x197   : > { %575 = vmatmul.msk.bf16.vlgmr.msra.gmra.mxu3 %vm198_vm0, %v301_v6 }
 0x198   : > { %624 = vpow2.f32 %v442_v8 }
 0x19e   : > { %v625_v9 = vpop.eup %624 }
 0x19f   : > { %v447_v10 = vpack.c.bf16 %v625_v9, %v625_v9  ;;  %v444_v11 = vsel %vm198_vm0, %v625_v9, 0.0 }
 0x1a0   : > { %576 = vmatmul.msk.bf16.vlgmr.msrb.gmra.mxu1 %vm198_vm0, %v339_v59  ;;  %445 = vadd.xlane.f32.xlu2 %v444_v11 }
 0x1a1   : > { %579 = vmatmul.msk.bf16.vlgmr.msrb.gmra.mxu2 %vm198_vm0, %v447_v10 }
 0x1a6   : > { %v376_v18 = vpop.permute.xlu0 %375 }
 0x1a7   : > { %v381_v19 = vsel %vm237_vm2, %v376_v18, 0 }
 0x1a8   : > { %390 = vmatpush.bf16.msrb.mxu3 %v381_v19 }
 0x209   : > { %v300_v31 = vpop.xlane.xlu0 %299 }
 0x20d   : > { %v250_v12 = vpop.f32.mrf.mxu1 }
 0x213   : > { %v446_v32 = vpop.xlane.xlu2 %445 }
 0x215   : > { %v252_v13 = vpop.f32.mrf.mxu1 }
 0x21a   : > { %v319_v20 = vpop.f32.mrf.mxu3 }
 0x21d   : > { %v360_v14 = vpop.f32.mrf.mxu1 }
 0x21e   : > { %v364_v15 = vsel %vm220_vm1, %v360_v14, -inf }
 0x21f   : > { %v365_v16 = vsel %vm198_vm0, %v364_v15, -inf }
 0x220   : > { %366 = vmax.xlane.f32.xlu1 %v365_v16 }
 0x222   : > { %v321_v21 = vpop.f32.mrf.mxu3 }
 0x224   : > { %v465_v22 = vpop.f32.mrf.mxu2 }
 0x225   : > { %v362_v17 = vpop.f32.mrf.mxu1 }
 0x22c   : > { %v467_v23 = vpop.f32.mrf.mxu2 }
 0x293   : > { %v367_v24 = vpop.xlane.xlu1 %366 }
 0x294   : > { %v368_v25 = vsub.f32 %v364_v15, %v367_v24 }
 0x296   : > { %v369_v26 = vmul.f32 1.442695, %v368_v25 }
 0x298   : > { %626 = vpow2.f32 %v369_v26 }
 0x299   : > { %628 = vrcp.f32 %v300_v31 }
 0x29a   : > { %630 = vrcp.f32 %v446_v32 }
 0x29e   : > { %v627_v27 = vpop.eup %626 }
 0x29f   : > { %v371_v28 = vsel %vm198_vm0, %v627_v27, 0.0  ;;  %v374_v29 = vpack.c.bf16 %v627_v27, %v627_v27  ;;  %v629_v33 = vpop.eup %628 }
 0x2a0   : > { %372 = vadd.xlane.f32.xlu1 %v371_v28  ;;  %v324_v34 = vmul.f32 %v629_v33, %v319_v20  ;;  %v631_v36 = vpop.eup %630 }
 0x2a1   : > { %577 = vmatmul.msk.bf16.vlgmr.msrb.gmra.mxu3 %vm198_vm0, %v374_v29  ;;  %v470_v37 = vmul.f32 %v631_v36, %v465_v22 }
 0x2a2   : > { %v325_v35 = vpack.c.bf16 %v324_v34, %v324_v34 }
 0x2a3   : > { %v471_v38 = vpack.c.bf16 %v470_v37, %v470_v37 }
 0x2a8   : > { %229 = vadd.xlane.f32.xlu1 %v228_v30 }
 0x2c1   : > { %327 = vrot.lane.b32.xlu1 %v325_v35, %s671_s3 }
 0x2c9   : > { %473 = vrot.lane.b32.xlu1 %v471_v38, %s672_s4 }
 0x313   : > { %v373_v39 = vpop.xlane.xlu1 %372 }
 0x31b   : > { %v230_v40 = vpop.xlane.xlu1 %229 }
 0x31c   : > { %632 = vrcp.f32 %v230_v40 }
 0x31d   : > { %634 = vrcp.f32 %v373_v39 }
 0x322   : > { %v633_v41 = vpop.eup %632 }
 0x323   : > { %v255_v42 = vmul.f32 %v633_v41, %v250_v12  ;;  %v635_v43 = vpop.eup %634 }
 0x324   : > { %v392_v44 = vpop.f32.mrf.mxu3 }
 0x325   : > { %v256_v45 = vpack.c.bf16 %v255_v42, %v255_v42  ;;  %v397_v46 = vmul.f32 %v635_v43, %v392_v44 }
 0x327   : > { %v398_v47 = vpack.c.bf16 %v397_v46, %v397_v46  ;;  %258 = vst.msk [vmem:[%s186_s7] sm:$0xf] %vm257_vm3, %v256_v45 }
 0x329   : > { %400 = vrot.lane.b32.xlu0 %v398_v47, %s673_s8 }
 0x32c   : > { %v394_v48 = vpop.f32.mrf.mxu3 }
 0x333   : > { %v328_v49 = vpop.permute.xlu1 %327 }
 0x334   : > { %331 = vst.msk [vmem:[%s186_s7] sm:$0xf] %vm330_vm4, %v328_v49 }
 0x33b   : > { %v474_v51 = vpop.permute.xlu1 %473 }
 0x39b   : > { %v401_v50 = vpop.permute.xlu0 %400 }
 0x39c   : > { %404 = vst.msk [vmem:[%s186_s7] sm:$0xf] %vm403_vm5, %v401_v50 }
 0x39d   : > { %477 = vst.msk [vmem:[%s186_s7] sm:$0xf] %vm476_vm6, %v474_v51 }
 0x39e PF: > { %s12_s11 = sadd.s32 1, %s658_s11   ;;  %s784_s9 = smov %s654_s10 }
 0x39f   : > { %p9_p5 = scmp.ge.s32.totalorder %s12_s11, 4   ;;  %s785_s10 = smov %s787_s12 }
 0x3a1   :  { %11 = sbr.rel (!%p9_p5) target bundleno = 2 (0x2), region = 61 }

// kernel: _lambda_.17
= control target key start
LH: loop header
LB: loop body
LE: loop exit
PB: predicated region body
PF: predicated region fallthrough
CT: control target
= control target key end

     0   :  { %vm22_vm0 = vcmask 261120   ;;  %v118_v1 = vmov 0.0   ;;  %vm90_vm1 = vcmask 257024   ;;  %s170_s1 = inlined_call_operand.vmem [shape: bf16[32,32], index: 1, kind: input, shape index: {}]   ;;  %s171_s0 = inlined_call_operand.vmem [shape: bf16[16,32], index: 0, kind: input, shape index: {}]   ;;  %s172_s2 = inlined_call_operand.vmem [shape: bf16[1,32], index: 2, kind: input, shape index: {}]   ;;  %s173_s3 = inlined_call_operand.vmem [shape: bf16[16,32], index: 3, kind: input, shape index: {}]   ;;  %s174_s4 = inlined_call_operand.vmem [shape: bf16[16,32], index: 4, kind: output, shape index: {}]  }
   0x1   :  { %v112_v0 = vld [vmem:[%s170_s1 + $0x8] sm:$0xff]  ;;  %23 = vst.msk [vmem:[#allocation2] sm:$0xff] %vm22_vm0, %v118_v1  ;;  %v111_v2 = vld [vmem:[%s170_s1] sm:$0xff] }
   0x2   :  { %24 = vst.msk [vmem:[#allocation2 + $0x8] sm:$0xff] %vm22_vm0, %v118_v1  ;;  %60 = vmatpush.bf16.msra.mxu0 %v112_v0  ;;  %v110_v3 = vld [vmem:[%s171_s0] sm:$0xff] }
   0x3   :  { %v77_v6 = vld [vmem:[%s172_s2] sm:$0x1] }
   0x4   :  { %v78_v8 = vunpack.c.l.bf16 %v77_v6  ;;  %v114_v9 = vld [vmem:[%s173_s3] sm:$0xff]  }
   0x5   :  { %v115_v13 = vunpack.c.l.bf16 %v114_v9  ;;  %v116_v19 = vunpack.c.h.bf16 %v114_v9 }
   0x6   :  { %61 = vmatpush.bf16.msra.mxu0 %v111_v2  ;;  %v79_v11 = vperm.slane %v78_v8, 0 }
   0x8   :  { %v25_v4 = vld [vmem:[#allocation2] sm:$0xff] }
   0x9   :  { %109 = vmatmul.msk.bf16.vlgmr.msra.gmra.mxu0 %vm22_vm0, %v110_v3  ;;  %v26_v10 = vld [vmem:[#allocation2 + $0x8] sm:$0xff] }
  0x86   :  { %v63_v5 = vpop.f32.mrf.mxu0 }
  0x87   :  { %v68_v7 = vadd.f32 %v63_v5, %v25_v4 }
  0x89   :  { %70 = vst.msk [vmem:[#allocation2] sm:$0xff] %vm22_vm0, %v68_v7 }
  0x8e   :  { %v65_v12 = vpop.f32.mrf.mxu0 }
  0x8f   :  { %v69_v14 = vadd.f32 %v65_v12, %v26_v10 }
  0x90   :  { %v75_v15 = vld [vmem:[#allocation2] sm:$0xff] }
  0x91   :  { %v80_v16 = vadd.f32 %v79_v11, %v75_v15  ;;  %71 = vst.msk [vmem:[#allocation2 + $0x8] sm:$0xff] %vm22_vm0, %v69_v14 }
  0x93   :  { %v86_v17 = vadd.f32 %v115_v13, %v80_v16 }
  0x95   :  { %v88_v18 = vpack.c.bf16 %v86_v17, %v86_v17 }
  0x97   :  { %91 = vst.msk [vmem:[%s174_s4] sm:$0xf] %vm90_vm1, %v88_v18 }
  0x98   :  { %v76_v20 = vld [vmem:[#allocation2 + $0x8] sm:$0xff] }
  0x99   :  { %v81_v21 = vadd.f32 %v79_v11, %v76_v20 }
  0x9b   :  { %v87_v22 = vadd.f32 %v116_v19, %v81_v21 }
  0x9d   :  { %v89_v23 = vpack.c.bf16 %v87_v22, %v87_v22 }
  0x9f   :  { %92 = vst.msk [vmem:[%s174_s4 + $0x4] sm:$0xf] %vm90_vm1, %v89_v23 }

// kernel: _lambda_.18
= control target key start
LH: loop header
LB: loop body
LE: loop exit
PB: predicated region body
PF: predicated region fallthrough
CT: control target
= control target key end

     0   :  { %vm29_vm0 = vcmask 261120   ;;  %v236_v5 = vmov 32.0   ;;  %vm95_vm6 = vcmask 257024   ;;  %s293_s0 = inlined_call_operand.vmem [shape: bf16[16,32], index: 0, kind: input, shape index: {}]   ;;  %s294_s1 = inlined_call_operand.vmem [shape: f32[1,32], index: 1, kind: input, shape index: {}]   ;;  %s295_s2 = inlined_call_operand.vmem [shape: f32[1,32], index: 2, kind: input, shape index: {}]   ;;  %s296_s3 = inlined_call_operand.vmem [shape: bf16[32,128], index: 3, kind: input, shape index: {}]   ;;  %s297_s4 = inlined_call_operand.vmem [shape: bf16[1,128], index: 4, kind: input, shape index: {}]   ;;  %s298_s5 = inlined_call_operand.vmem [shape: bf16[16,128], index: 5, kind: output, shape index: {}]  }
   0x1   :  { %v211_v0 = vld [vmem:[%s293_s0] sm:$0xff]   ;;  %222 = vrcp.f32 %v236_v5  ;;  %v209_v25 = vld [vmem:[%s296_s3 + $0x8] sm:$0xff] }
   0x2   :  { %v212_v1 = vunpack.c.l.bf16 %v211_v0  ;;  %v213_v3 = vunpack.c.h.bf16 %v211_v0  ;;  %134 = vmatpush.bf16.msra.mxu0 %v209_v25  ;;  %v208_v28 = vld [vmem:[%s296_s3] sm:$0xff] }
   0x3   :  { %v220_v38 = vld [vmem:[%s294_s1] ss:$0 sm:$0xff] }
   0x4   :  { %v30_v2 = vsel %vm29_vm0, %v212_v1, 0.0  ;;  %v33_v4 = vsel %vm29_vm0, %v213_v3, 0.0  ;;  %v221_v41 = vld [vmem:[%s295_s2] ss:$0 sm:$0xff] }
   0x5   :  { %31 = vadd.xlane.f32.xlu0 %v30_v2  ;;  %v104_v55 = vld [vmem:[%s297_s4] sm:$0x1] }
   0x6   :  { %135 = vmatpush.bf16.msra.mxu0 %v208_v28  ;;  %v105_v56 = vunpack.c.l.bf16 %v104_v55 }
   0x7   :  { %v223_v6 = vpop.eup %222 }
   0x8   :  { %v37_v7 = vmul.f32 32.0, %v223_v6  ;;  %vm41_vm1 = vweird.f32 %v223_v6  ;;  %v106_v57 = vperm.slane %v105_v56, 0 }
   0xa   :  { %v38_v8 = vsub.f32 1.0, %v37_v7 }
   0xc   :  { %v39_v9 = vmul.f32 %v223_v6, %v38_v8 }
   0xd   :  { %34 = vadd.xlane.f32.xlu0 %v33_v4 }
   0xe   :  { %v40_v10 = vadd.f32 %v223_v6, %v39_v9 }
  0x10   :  { %v42_v11 = vsel %vm41_vm1, %v223_v6, %v40_v10 }
  0x78   :  { %v32_v12 = vpop.xlane.xlu0 %31 }
  0x79   :  { %v43_v13 = vmul.f32 %v42_v11, %v32_v12 }
  0x7b   :  { %v45_v14 = vsub.f32 %v212_v1, %v43_v13 }
  0x7d   :  { %v47_v15 = vmul.f32 %v45_v14, %v45_v14 }
  0x7f   :  { %v49_v16 = vsel %vm29_vm0, %v47_v15, 0.0 }
  0x80   :  { %50 = vadd.xlane.f32.xlu1 %v49_v16  ;;  %v35_v17 = vpop.xlane.xlu0 %34 }
  0x81   :  { %v44_v18 = vmul.f32 %v42_v11, %v35_v17 }
  0x83   :  { %v46_v19 = vsub.f32 %v213_v3, %v44_v18 }
  0x85   :  { %v48_v20 = vmul.f32 %v46_v19, %v46_v19 }
  0x87   :  { %v52_v21 = vsel %vm29_vm0, %v48_v20, 0.0 }
  0x88   :  { %53 = vadd.xlane.f32.xlu1 %v52_v21 }
  0xf3   :  { %v51_v22 = vpop.xlane.xlu1 %50 }
  0xf4   :  { %v55_v23 = vmul.f32 %v51_v22, %v42_v11 }
  0xf6   :  { %v57_v24 = vadd.f32 1e-05, %v55_v23 }
  0xf8   :  { %224 = vrsqrt.f32 %v57_v24  ;;  %vm65_vm3 = vweird.f32 %v57_v24 }
  0xfb   :  { %v54_v26 = vpop.xlane.xlu1 %53 }
  0xfc   :  { %v56_v27 = vmul.f32 %v54_v26, %v42_v11 }
  0xfe   :  { %v225_v29 = vpop.eup %224  ;;  %v58_v30 = vadd.f32 1e-05, %v56_v27 }
  0xff   :  { %v60_v31 = vmul.f32 %v225_v29, %v57_v24  ;;  %vm66_vm2 = vweird.f32 %v225_v29 }
 0x100   :  { %226 = vrsqrt.f32 %v58_v30  ;;  %vm67_vm4 = vmor %vm65_vm3, %vm66_vm2  ;;  %vm75_vm7 = vweird.f32 %v58_v30 }
 0x101   :  { %v61_v32 = vmul.f32 %v225_v29, %v60_v31 }
 0x103   :  { %v62_v33 = vmul.f32 0.5, %v61_v32 }
 0x105   :  { %v63_v34 = vsub.f32 1.5, %v62_v33 }
 0x106   :  { %v227_v35 = vpop.eup %226 }
 0x107   :  { %v64_v36 = vmul.f32 %v225_v29, %v63_v34  ;;  %v70_v37 = vmul.f32 %v227_v35, %v58_v30  ;;  %vm76_vm5 = vweird.f32 %v227_v35 }
 0x108   :  { %vm77_vm8 = vmor %vm75_vm7, %vm76_vm5 }
 0x109   :  { %v68_v39 = vsel %vm67_vm4, %v225_v29, %v64_v36  ;;  %v71_v40 = vmul.f32 %v227_v35, %v70_v37 }
 0x10a   :  { %v79_v42 = vmul.f32 %v68_v39, %v45_v14 }
 0x10b   :  { %v72_v43 = vmul.f32 0.5, %v71_v40 }
 0x10c   :  { %v85_v44 = vmul.f32 %v220_v38, %v79_v42 }
 0x10d   :  { %v73_v45 = vsub.f32 1.5, %v72_v43 }
 0x10e   :  { %v91_v46 = vadd.f32 %v221_v41, %v85_v44 }
 0x10f   :  { %v74_v47 = vmul.f32 %v227_v35, %v73_v45 }
 0x110   :  { %v93_v48 = vpack.c.bf16 %v91_v46, %v91_v46 }
 0x111   :  { %v78_v49 = vsel %vm77_vm8, %v227_v35, %v74_v47 }
 0x112   :  { %96 = vst.msk [vmem:[#allocation2] sm:$0xf] %vm95_vm6, %v93_v48  ;;  %v80_v50 = vmul.f32 %v78_v49, %v46_v19 }
 0x114   :  { %v86_v51 = vmul.f32 %v220_v38, %v80_v50 }
 0x116   :  { %v92_v52 = vadd.f32 %v221_v41, %v86_v51 }
 0x118   :  { %v94_v53 = vpack.c.bf16 %v92_v52, %v92_v52 }
 0x11a   :  { %97 = vst.msk [vmem:[#allocation2 + $0x4] sm:$0xf] %vm95_vm6, %v94_v53 }
 0x121   :  { %v207_v54 = vld [vmem:[#allocation2] sm:$0xff] }
 0x122   :  { %204 = vmatmul.msk.bf16.vlgmr.msra.gmra.mxu0 %vm29_vm0, %v207_v54 }
 0x19f   :  { %v137_v58 = vpop.f32.mrf.mxu0 }
 0x1a0   :  { %v138_v59 = vadd.f32 %v137_v58, %v106_v57 }
 0x1a2   :  { %v205_v60 = vmul.f32 -1.702, %v138_v59 }
 0x1a4   :  { %v146_v61 = vmul.f32 1.442695, %v205_v60 }
 0x1a6   :  { %228 = vpow2.f32 %v146_v61 }
 0x1a7   :  { %v139_v62 = vpop.f32.mrf.mxu0 }
 0x1a8   :  { %v140_v63 = vadd.f32 %v139_v62, %v106_v57 }
 0x1aa   :  { %v206_v0 = vmul.f32 -1.702, %v140_v63 }
 0x1ac   :  { %v229_v1 = vpop.eup %228  ;;  %v148_v2 = vmul.f32 1.442695, %v206_v0 }
 0x1ad   :  { %v150_v3 = vadd.f32 1.0, %v229_v1 }
 0x1ae   :  { %230 = vpow2.f32 %v148_v2 }
 0x1af   :  { %232 = vrcp.f32 %v150_v3  ;;  %v163_v13 = vand.u32 2147483648, %v150_v3  ;;  %vm157_vm10 = vweird.f32 %v150_v3  ;;  %v161_v14 = vand.u32 2147483647, %v150_v3 }
 0x1b1   :  { %v164_v20 = vor.u32 1.1754944e-38, %v163_v13  ;;  %vm162_vm13 = vcmp.eq.f32.partialorder %v161_v14, 8.507059e+37 }
 0x1b4   :  { %v231_v4 = vpop.eup %230 }
 0x1b5   :  { %v233_v5 = vpop.eup %232  ;;  %v151_v6 = vadd.f32 1.0, %v231_v4 }
 0x1b6   :  { %v153_v7 = vmul.f32 %v233_v5, %v150_v3  ;;  %vm158_vm9 = vweird.f32 %v233_v5 }
 0x1b7   :  { %234 = vrcp.f32 %v151_v6  ;;  %vm159_vm11 = vmor %vm157_vm10, %vm158_vm9  ;;  %v178_v16 = vand.u32 2147483648, %v151_v6  ;;  %v176_v19 = vand.u32 2147483647, %v151_v6  ;;  %vm172_vm14 = vweird.f32 %v151_v6 }
 0x1b8   :  { %v154_v8 = vsub.f32 1.0, %v153_v7 }
 0x1b9   :  { %v179_v23 = vor.u32 1.1754944e-38, %v178_v16  ;;  %vm177_vm0 = vcmp.eq.f32.partialorder %v176_v19, 8.507059e+37 }
 0x1ba   :  { %v155_v9 = vmul.f32 %v233_v5, %v154_v8 }
 0x1bc   :  { %v156_v11 = vadd.f32 %v233_v5, %v155_v9 }
 0x1bd   :  { %v235_v10 = vpop.eup %234 }
 0x1be   :  { %v168_v12 = vmul.f32 %v235_v10, %v151_v6  ;;  %v160_v17 = vsel %vm159_vm11, %v233_v5, %v156_v11  ;;  %vm173_vm12 = vweird.f32 %v235_v10 }
 0x1bf   :  { %v165_v22 = vsel %vm162_vm13, %v164_v20, %v160_v17  ;;  %vm174_vm15 = vmor %vm172_vm14, %vm173_vm12 }
 0x1c0   :  { %v169_v15 = vsub.f32 1.0, %v168_v12  ;;  %v182_v26 = vmul.f32 %v165_v22, %v138_v59 }
 0x1c2   :  { %v170_v18 = vmul.f32 %v235_v10, %v169_v15 }
 0x1c4   :  { %v171_v21 = vadd.f32 %v235_v10, %v170_v18 }
 0x1c6   :  { %v175_v24 = vsel %vm174_vm15, %v235_v10, %v171_v21 }
 0x1c7   :  { %v180_v25 = vsel %vm177_vm0, %v179_v23, %v175_v24 }
 0x1c8   :  { %v183_v27 = vmul.f32 %v180_v25, %v140_v63 }
 0x1ca   :  { %v217_v28 = vpack.c.bf16 %v183_v27, %v182_v26 }
 0x1cc   :  { %218 = vst [vmem:[%s298_s5] sm:$0xff] %v217_v28  }

// kernel: _lambda_.19
= control target key start
LH: loop header
LB: loop body
LE: loop exit
PB: predicated region body
PF: predicated region fallthrough
CT: control target
= control target key end

     0   :  { %vm21_vm0 = vcmask 261120   ;;  %v192_v2 = vmov 0.0   ;;  %vm135_vm1 = vcmask 257024   ;;  %s261_s1 = inlined_call_operand.vmem [shape: bf16[128,32], index: 1, kind: input, shape index: {}]   ;;  %s262_s0 = inlined_call_operand.vmem [shape: bf16[16,128], index: 0, kind: input, shape index: {}]   ;;  %s263_s2 = inlined_call_operand.vmem [shape: bf16[1,32], index: 2, kind: input, shape index: {}]   ;;  %s264_s3 = inlined_call_operand.vmem [shape: bf16[16,32], index: 3, kind: input, shape index: {}]   ;;  %s265_s4 = inlined_call_operand.vmem [shape: bf16[16,32], index: 4, kind: output, shape index: {}]  }
   0x1   :  { %v186_v0 = vld [vmem:[%s261_s1 + $0x38] sm:$0xff]  ;;  %v185_v1 = vld [vmem:[%s261_s1 + $0x30] sm:$0xff]  ;;  %22 = vst.msk [vmem:[#allocation2] sm:$0xff] %vm21_vm0, %v192_v2  ;;  %v184_v3 = vld [vmem:[%s261_s1 + $0x28] sm:$0xff] }
   0x2   :  { %98 = vmatpush.bf16.msra.mxu0 %v186_v0  ;;  %23 = vst.msk [vmem:[#allocation2 + $0x8] sm:$0xff] %vm21_vm0, %v192_v2  ;;  %v183_v4 = vld [vmem:[%s261_s1 + $0x20] sm:$0xff]  ;;  %v182_v5 = vld [vmem:[%s261_s1 + $0x18] sm:$0xff]  ;;  %v181_v6 = vld [vmem:[%s261_s1 + $0x10] sm:$0xff] }
   0x3   :  { %v180_v7 = vld [vmem:[%s261_s1 + $0x8] sm:$0xff]  ;;  %v179_v8 = vld [vmem:[%s261_s1] sm:$0xff] }
   0x4   :  { %v178_v9 = vld [vmem:[%s262_s0] sm:$0xff] }
   0x5   :  { %v122_v12 = vld [vmem:[%s263_s2] sm:$0x1] }
   0x6   :  { %99 = vmatpush.bf16.msra.mxu0 %v185_v1  ;;  %v123_v14 = vunpack.c.l.bf16 %v122_v12  ;;  %v188_v15 = vld [vmem:[%s264_s3] sm:$0xff]  }
   0x7   :  { %v189_v19 = vunpack.c.l.bf16 %v188_v15  ;;  %v190_v25 = vunpack.c.h.bf16 %v188_v15 }
   0x8   :  { %v24_v10 = vld [vmem:[#allocation2] sm:$0xff]  ;;  %v124_v17 = vperm.slane %v123_v14, 0 }
   0x9   :  { %v25_v16 = vld [vmem:[#allocation2 + $0x8] sm:$0xff] }
   0xa   :  { %100 = vmatpush.bf16.msra.mxu0 %v184_v3 }
   0xe   :  { %101 = vmatpush.bf16.msra.mxu0 %v183_v4 }
  0x12   :  { %102 = vmatpush.bf16.msra.mxu0 %v182_v5 }
  0x16   :  { %103 = vmatpush.bf16.msra.mxu0 %v181_v6 }
  0x1a   :  { %104 = vmatpush.bf16.msra.mxu0 %v180_v7 }
  0x1e   :  { %105 = vmatpush.bf16.msra.mxu0 %v179_v8 }
  0x21   :  { %106 = vmatmul.bf16.vlgmr.msra.gmra.mxu0 %v178_v9 }
  0x9e   :  { %v107_v11 = vpop.f32.mrf.mxu0 }
  0x9f   :  { %v112_v13 = vadd.f32 %v107_v11, %v24_v10 }
  0xa1   :  { %115 = vst.msk [vmem:[#allocation2] sm:$0xff] %vm21_vm0, %v112_v13 }
  0xa6   :  { %v109_v18 = vpop.f32.mrf.mxu0 }
  0xa7   :  { %v113_v20 = vadd.f32 %v109_v18, %v25_v16 }
  0xa8   :  { %v120_v21 = vld [vmem:[#allocation2] sm:$0xff] }
  0xa9   :  { %v125_v22 = vadd.f32 %v124_v17, %v120_v21  ;;  %116 = vst.msk [vmem:[#allocation2 + $0x8] sm:$0xff] %vm21_vm0, %v113_v20 }
  0xab   :  { %v131_v23 = vadd.f32 %v189_v19, %v125_v22 }
  0xad   :  { %v133_v24 = vpack.c.bf16 %v131_v23, %v131_v23 }
  0xaf   :  { %136 = vst.msk [vmem:[%s265_s4] sm:$0xf] %vm135_vm1, %v133_v24 }
  0xb0   :  { %v121_v26 = vld [vmem:[#allocation2 + $0x8] sm:$0xff] }
  0xb1   :  { %v126_v27 = vadd.f32 %v124_v17, %v121_v26 }
  0xb3   :  { %v132_v28 = vadd.f32 %v190_v25, %v126_v27 }
  0xb5   :  { %v134_v29 = vpack.c.bf16 %v132_v28, %v132_v28 }
  0xb7   :  { %137 = vst.msk [vmem:[%s265_s4 + $0x4] sm:$0xf] %vm135_vm1, %v134_v29 }

// kernel: _lambda_.25
= control target key start
LH: loop header
LB: loop body
LE: loop exit
PB: predicated region body
PF: predicated region fallthrough
CT: control target
= control target key end

     0   :  { %vm27_vm0 = vcmask 254976   ;;  %v132_v3 = vmov 32.0   ;;  %vm68_vm5 = vcmask 253952   ;;  %vm90_vm6 = vcmask 261120   ;;  %s186_s0 = inlined_call_operand.vmem [shape: bf16[2,32], index: 0, kind: input, shape index: {}]   ;;  %s187_s1 = inlined_call_operand.vmem [shape: f32[1,32], index: 1, kind: input, shape index: {}]   ;;  %s188_s2 = inlined_call_operand.vmem [shape: f32[1,32], index: 2, kind: input, shape index: {}]   ;;  %s189_s3 = inlined_call_operand.vmem [shape: bf16[32,16], index: 3, kind: input, shape index: {}]   ;;  %s190_s4 = inlined_call_operand.vmem [shape: bf16[1,16], index: 4, kind: input, shape index: {}]   ;;  %s191_s5 = inlined_call_operand.vmem [shape: bf16[2,16], index: 5, kind: output, shape index: {}]  }
   0x1   :  { %v25_v0 = vld [vmem:[%s186_s0] sm:$0x1]  ;;  %128 = vrcp.f32 %v132_v3  ;;  %v124_v15 = vld [vmem:[%s189_s3 + $0x8] sm:$0xff]  ;;  %vm108_vm7 = vcmask 122880  }
   0x2   :  { %v26_v1 = vunpack.c.l.bf16 %v25_v0  ;;  %100 = vmatpush.bf16.msra.mxu0 %v124_v15  ;;  %v123_v17 = vld [vmem:[%s189_s3] sm:$0xff] }
   0x3   :  { %v126_v26 = vld [vmem:[%s187_s1] ss:$0 sm:$0xff] }
   0x4   :  { %v28_v2 = vsel %vm27_vm0, %v26_v1, 0.0  ;;  %v127_v28 = vld [vmem:[%s188_s2] ss:$0 sm:$0xff] }
   0x5   :  { %29 = vadd.xlane.f32.xlu0 %v28_v2  ;;  %v75_v34 = vld [vmem:[%s190_s4] sm:$0x1] }
   0x6   :  { %101 = vmatpush.bf16.msra.mxu0 %v123_v17  ;;  %v76_v35 = vunpack.c.l.bf16 %v75_v34 }
   0x7   :  { %v129_v4 = vpop.eup %128 }
   0x8   :  { %v32_v5 = vmul.f32 32.0, %v129_v4  ;;  %vm36_vm1 = vweird.f32 %v129_v4  ;;  %v77_v36 = vperm.slane %v76_v35, 0 }
   0xa   :  { %v33_v6 = vsub.f32 1.0, %v32_v5 }
   0xc   :  { %v34_v7 = vmul.f32 %v129_v4, %v33_v6 }
   0xe   :  { %v35_v8 = vadd.f32 %v129_v4, %v34_v7 }
  0x10   :  { %v37_v9 = vsel %vm36_vm1, %v129_v4, %v35_v8 }
  0x78   :  { %v30_v10 = vpop.xlane.xlu0 %29 }
  0x79   :  { %v38_v11 = vmul.f32 %v37_v9, %v30_v10 }
  0x7b   :  { %v39_v12 = vsub.f32 %v26_v1, %v38_v11 }
  0x7d   :  { %v40_v13 = vmul.f32 %v39_v12, %v39_v12 }
  0x7f   :  { %v41_v14 = vsel %vm27_vm0, %v40_v13, 0.0 }
  0x80   :  { %42 = vadd.xlane.f32.xlu0 %v41_v14 }
  0xf3   :  { %v43_v16 = vpop.xlane.xlu0 %42 }
  0xf4   :  { %v44_v18 = vmul.f32 %v43_v16, %v37_v9 }
  0xf6   :  { %v45_v19 = vadd.f32 1e-05, %v44_v18 }
  0xf8   :  { %130 = vrsqrt.f32 %v45_v19  ;;  %vm52_vm3 = vweird.f32 %v45_v19 }
  0xfe   :  { %v131_v20 = vpop.eup %130 }
  0xff   :  { %v47_v21 = vmul.f32 %v131_v20, %v45_v19  ;;  %vm53_vm2 = vweird.f32 %v131_v20 }
 0x100   :  { %vm54_vm4 = vmor %vm52_vm3, %vm53_vm2 }
 0x101   :  { %v48_v22 = vmul.f32 %v131_v20, %v47_v21 }
 0x103   :  { %v49_v23 = vmul.f32 0.5, %v48_v22 }
 0x105   :  { %v50_v24 = vsub.f32 1.5, %v49_v23 }
 0x107   :  { %v51_v25 = vmul.f32 %v131_v20, %v50_v24 }
 0x109   :  { %v55_v27 = vsel %vm54_vm4, %v131_v20, %v51_v25 }
 0x10a   :  { %v56_v29 = vmul.f32 %v55_v27, %v39_v12 }
 0x10c   :  { %v61_v30 = vmul.f32 %v126_v26, %v56_v29 }
 0x10e   :  { %v66_v31 = vadd.f32 %v127_v28, %v61_v30 }
 0x110   :  { %v67_v32 = vpack.c.bf16 %v66_v31, %v66_v31 }
 0x112   :  { %69 = vst.msk [vmem:[#allocation2] sm:$0x1] %vm68_vm5, %v67_v32 }
 0x119   :  { %v70_v33 = vld [vmem:[#allocation2] sm:$0x1] }
 0x11a   :  { %122 = vmatmul.msk.bf16.vlgmr.msra.gmra.mxu0 %vm90_vm6, %v70_v33 }
 0x197   :  { %v103_v37 = vpop.f32.mrf.mxu0 }
 0x198   :  { %v104_v38 = vadd.f32 %v103_v37, %v77_v36 }
 0x19a   :  { %v107_v39 = vpack.c.bf16 %v104_v38, %v104_v38 }
 0x19c   :  { %109 = vst.msk [vmem:[%s191_s5] sm:$0x1] %vm108_vm7, %v107_v39 }
 0x19f   :  { %v105_v40 = vpop.f32.mrf.mxu0 }

</bundles_post_ra>
